<compile_context>
chip_gen: v7x
topology: tpu7x:2x2x1
jax: 0.10.0
libtpu: 0.0.40
codegen_flags: <defaults>
</compile_context>

<pallas_src>
import functools

import jax
import jax.numpy as jnp
import numpy as np
from jax import lax
from jax.experimental import pallas as pl
from jax.experimental.pallas import tpu as pltpu


def conv_relu_kernel(x_ref, w_ref, b_ref, o_ref, p_ref, *, KH, KW, W, M):
    # x_ref: (1, 1, TOT)     B images flattened + zero tail padding (f32)
    # w_ref: (OC, KKP)       dense weight tile, contraction padded 25 -> 32
    # b_ref: (OC, 1)         bias column (f32)
    # o_ref: (1, OC, M)      lane-dense output block, M = B*H*W
    # p_ref: (KKP, M) VMEM   im2col patch-matrix scratch (f32 or bf16)
    KK = KH * KW
    KKP = p_ref.shape[0]                       # multiple of 8 (full sublanes)

    # Review item 2: load the flat image block ONCE; every shifted patch row
    # is a static-lane-offset slice of this in-register value instead of a
    # fresh VMEM re-read.
    flat = x_ref[0]                            # (1, TOT)

    zero_row = jnp.zeros((1, M), p_ref.dtype)
    rows = []
    for r in range(KKP):                       # statically unrolled (item 9)
        if r < KK:
            ki, kj = divmod(r, KW)
            s = ki * W + kj                    # compile-time lane shift
            rows.append(flat[:, s:s + M].astype(p_ref.dtype))
        else:
            rows.append(zero_row)              # explicit zero contraction pad

    # Review item 1: write the patch matrix with full-sublane (8, M) stores
    # (unmasked vst) instead of 25 sublane-masked single-row stores.
    for g in range(KKP // 8):
        p_ref[8 * g:8 * (g + 1), :] = jnp.concatenate(
            rows[8 * g:8 * (g + 1)], axis=0)

    # (OC, KKP) @ (KKP, M) on the MXU with f32 accumulation; padded rows and
    # columns are zero on both sides so they contribute nothing.
    acc = jnp.dot(w_ref[...], p_ref[...], preferred_element_type=jnp.float32)
    o_ref[0] = jnp.maximum(acc + b_ref[...], 0.0).astype(o_ref.dtype)


def _pick_block_images(N):
    # Amortize the ~0.35us/step overhead with big batch blocks, but keep >= 2
    # grid steps whenever N >= 2 so the "parallel" batch axis can shard across
    # v7x's two TensorCores (review items 4 and 5).
    if N <= 1:
        return 1
    return min(64, -(-N // 2))


def cnet_forward(x, weight, bias, *, block_images=None,
                 staging_dtype=jnp.float32):
    """x: (N, 1, H, W); weight: (OC, 1, KH, KW); bias: (OC,).  Returns NCHW.

    staging_dtype=jnp.bfloat16 stages the im2col patches and weights in bf16
    (with f32 MXU accumulation) -- the fast path on v6e/v7x.
    """
    N, C, H, W = x.shape
    assert C == 1, "CNet's conv1 has a single input channel"
    OC, _, KH, KW = weight.shape
    OH, OW = H - KH + 1, W - KW + 1

    B = _pick_block_images(N) if block_images is None else block_images
    G = (N + B - 1) // B              # grid steps (batch blocks)
    Npad = G * B
    IMG = H * W
    M = B * IMG                       # lane-dense flattened block width
    max_shift = (KH - 1) * W + (KW - 1)
    PAD = ((max_shift + 127) // 128) * 128 if max_shift > 0 else 0
    TOT = M + PAD

    KK = KH * KW
    KKP = ((KK + 7) // 8) * 8         # contraction dim padded to full sublanes

    # ---- wrapper-side layout plumbing (free; done by XLA) -------------------
    x_flat = x.reshape(N, IMG).astype(jnp.float32)
    if Npad != N:
        x_flat = jnp.concatenate(
            [x_flat, jnp.zeros((Npad - N, IMG), jnp.float32)], axis=0)
    x_grp = x_flat.reshape(G, 1, M)
    if PAD:
        x_grp = jnp.pad(x_grp, ((0, 0), (0, 0), (0, PAD)))

    w2 = weight.reshape(OC, KK).astype(staging_dtype)
    if KKP != KK:
        w2 = jnp.pad(w2, ((0, 0), (0, KKP - KK)))         # zero columns
    b2 = bias.reshape(OC, 1).astype(jnp.float32)

    kernel = functools.partial(conv_relu_kernel, KH=KH, KW=KW, W=W, M=M)

    itemsize = jnp.dtype(staging_dtype).itemsize
    flops = 2 * N * OH * OW * KK * OC
    bytes_accessed = (4 * Npad * TOT + itemsize * OC * KKP + 4 * OC
                      + 4 * G * OC * M)

    y = pl.pallas_call(
        kernel,
        out_shape=jax.ShapeDtypeStruct((G, OC, M), jnp.float32),
        grid=(G,),
        in_specs=[
            pl.BlockSpec((1, 1, TOT), lambda g: (g, 0, 0)),
            pl.BlockSpec((OC, KKP), lambda g: (0, 0)),
            pl.BlockSpec((OC, 1), lambda g: (0, 0)),
        ],
        out_specs=pl.BlockSpec((1, OC, M), lambda g: (g, 0, 0)),
        scratch_shapes=[pltpu.VMEM((KKP, M), staging_dtype)],
        compiler_params=pltpu.CompilerParams(
            dimension_semantics=("parallel",)),
        cost_estimate=pl.CostEstimate(
            flops=flops, transcendentals=0, bytes_accessed=bytes_accessed),
    )(x_grp, w2, b2)

    # (G, OC, B*H*W) -> (G, OC, B, H, W) -> (G, B, OC, H, W) -> (Npad, OC, H, W)
    y = y.reshape(G, OC, B, H, W).transpose(0, 2, 1, 3, 4)
    y = y.reshape(Npad, OC, H, W)
    # Crop the valid conv window (drops the shifted-read "pollution" at the
    # borders and the zero-padded batch rows).
    return y[:N, :, :OH, :OW].astype(x.dtype)


def cnet_reference(x, weight, bias):
    """Plain-JAX reference (same semantics as F.relu(conv2d(x)))."""
    y = lax.conv_general_dilated(
        x, weight, window_strides=(1, 1), padding="VALID",
        dimension_numbers=("NCHW", "OIHW", "NCHW"),
        precision=lax.Precision.HIGHEST)
    return jnp.maximum(y + bias[None, :, None, None], 0.0)


if __name__ == "__main__":
    key = jax.random.PRNGKey(0)
    kw_, kb_, kx_ = jax.random.split(key, 3)

    # Deterministic synthetic parameters matching nn.Conv2d(1, 20, 5, 1).
    weight = jax.random.normal(kw_, (20, 1, 5, 5), dtype=jnp.float32) * 0.1
    bias = jax.random.normal(kb_, (20,), dtype=jnp.float32) * 0.1

    # NCHW input with a single channel; 16 images -> 2 grid steps of 8.
    x = jax.random.normal(kx_, (16, 1, 16, 16), dtype=jnp.float32)

    fwd = jax.jit(cnet_forward)
    out = jax.block_until_ready(fwd(x, weight, bias))
    ref = jax.block_until_ready(cnet_reference(x, weight, bias))
    assert out.shape == (16, 20, 12, 12), out.shape
    assert np.allclose(np.asarray(out), np.asarray(ref), atol=1e-4, rtol=1e-4), (
        "Pallas conv+relu does not match reference")

    # Batch-padding path (N not a multiple of the auto-chosen block).
    out2 = jax.block_until_ready(fwd(x[:3], weight, bias))
    assert out2.shape == (3, 20, 12, 12), out2.shape
    assert np.allclose(np.asarray(out2), np.asarray(ref[:3]),
                       atol=1e-4, rtol=1e-4), "padded-batch path mismatch"

    # bf16-staged fast path (v6e/v7x): deliberately loosened tolerance since
    # patches/weights are quantized to bf16 before the f32-accumulating dot.
    fwd_bf16 = jax.jit(functools.partial(cnet_forward,
                                         staging_dtype=jnp.bfloat16))
    out3 = jax.block_until_ready(fwd_bf16(x, weight, bias))
    assert np.allclose(np.asarray(out3), np.asarray(ref),
                       atol=5e-2, rtol=5e-2), "bf16-staged path mismatch"

    print("KERNEL_OK")
</pallas_src>

<mosaic_0001>
module attributes {stable_mosaic.version = 11 : i64} {
  func.func @conv_relu_kernel(%arg0: i32, %arg1: memref<1x1x2176xf32, #tpu.memory_space<vmem>>, %arg2: memref<20x32xf32, #tpu.memory_space<vmem>>, %arg3: memref<20x1xf32, #tpu.memory_space<vmem>>, %arg4: memref<1x20x2048xf32, #tpu.memory_space<vmem>>, %arg5: memref<32x2048xf32, #tpu.memory_space<vmem>>) attributes {dimension_semantics = [#tpu.dimension_semantics<parallel>], iteration_bounds = array<i64: 2>, scalar_prefetch = 0 : i64, scratch_operands = 1 : i64, tpu.core_type = #tpu.core_type<tc>, window_params = [{transform_indices = @transform_0, window_bounds = array<i64: 1, 1, 2176>}, {pipeline_mode = #tpu.pipeline_mode<synchronous>, transform_indices = @transform_1, window_bounds = array<i64: 20, 32>}, {pipeline_mode = #tpu.pipeline_mode<synchronous>, transform_indices = @transform_2, window_bounds = array<i64: 20, 1>}, {transform_indices = @transform_3, window_bounds = array<i64: 1, 20, 2048>}]} {
    %c0 = arith.constant 0 : index
    %c0_0 = arith.constant 0 : index
    %c0_1 = arith.constant 0 : index
    %0 = vector.load %arg1[%c0, %c0_0, %c0_1] : memref<1x1x2176xf32, #tpu.memory_space<vmem>>, vector<1x1x2176xf32>
    %1 = vector.shape_cast %0 : vector<1x1x2176xf32> to vector<1x2176xf32>
    %cst = arith.constant 0.000000e+00 : f32
    %2 = vector.broadcast %cst : f32 to vector<1x2048xf32>
    %3 = vector.extract_strided_slice %1 {offsets = [0, 0], sizes = [1, 2048], strides = [1, 1]} : vector<1x2176xf32> to vector<1x2048xf32>
    %4 = vector.extract_strided_slice %1 {offsets = [0, 1], sizes = [1, 2048], strides = [1, 1]} : vector<1x2176xf32> to vector<1x2048xf32>
    %5 = vector.extract_strided_slice %1 {offsets = [0, 2], sizes = [1, 2048], strides = [1, 1]} : vector<1x2176xf32> to vector<1x2048xf32>
    %6 = vector.extract_strided_slice %1 {offsets = [0, 3], sizes = [1, 2048], strides = [1, 1]} : vector<1x2176xf32> to vector<1x2048xf32>
    %7 = vector.extract_strided_slice %1 {offsets = [0, 4], sizes = [1, 2048], strides = [1, 1]} : vector<1x2176xf32> to vector<1x2048xf32>
    %8 = vector.extract_strided_slice %1 {offsets = [0, 16], sizes = [1, 2048], strides = [1, 1]} : vector<1x2176xf32> to vector<1x2048xf32>
    %9 = vector.extract_strided_slice %1 {offsets = [0, 17], sizes = [1, 2048], strides = [1, 1]} : vector<1x2176xf32> to vector<1x2048xf32>
    %10 = vector.extract_strided_slice %1 {offsets = [0, 18], sizes = [1, 2048], strides = [1, 1]} : vector<1x2176xf32> to vector<1x2048xf32>
    %11 = vector.extract_strided_slice %1 {offsets = [0, 19], sizes = [1, 2048], strides = [1, 1]} : vector<1x2176xf32> to vector<1x2048xf32>
    %12 = vector.extract_strided_slice %1 {offsets = [0, 20], sizes = [1, 2048], strides = [1, 1]} : vector<1x2176xf32> to vector<1x2048xf32>
    %13 = vector.extract_strided_slice %1 {offsets = [0, 32], sizes = [1, 2048], strides = [1, 1]} : vector<1x2176xf32> to vector<1x2048xf32>
    %14 = vector.extract_strided_slice %1 {offsets = [0, 33], sizes = [1, 2048], strides = [1, 1]} : vector<1x2176xf32> to vector<1x2048xf32>
    %15 = vector.extract_strided_slice %1 {offsets = [0, 34], sizes = [1, 2048], strides = [1, 1]} : vector<1x2176xf32> to vector<1x2048xf32>
    %16 = vector.extract_strided_slice %1 {offsets = [0, 35], sizes = [1, 2048], strides = [1, 1]} : vector<1x2176xf32> to vector<1x2048xf32>
    %17 = vector.extract_strided_slice %1 {offsets = [0, 36], sizes = [1, 2048], strides = [1, 1]} : vector<1x2176xf32> to vector<1x2048xf32>
    %18 = vector.extract_strided_slice %1 {offsets = [0, 48], sizes = [1, 2048], strides = [1, 1]} : vector<1x2176xf32> to vector<1x2048xf32>
    %19 = vector.extract_strided_slice %1 {offsets = [0, 49], sizes = [1, 2048], strides = [1, 1]} : vector<1x2176xf32> to vector<1x2048xf32>
    %20 = vector.extract_strided_slice %1 {offsets = [0, 50], sizes = [1, 2048], strides = [1, 1]} : vector<1x2176xf32> to vector<1x2048xf32>
    %21 = vector.extract_strided_slice %1 {offsets = [0, 51], sizes = [1, 2048], strides = [1, 1]} : vector<1x2176xf32> to vector<1x2048xf32>
    %22 = vector.extract_strided_slice %1 {offsets = [0, 52], sizes = [1, 2048], strides = [1, 1]} : vector<1x2176xf32> to vector<1x2048xf32>
    %23 = vector.extract_strided_slice %1 {offsets = [0, 64], sizes = [1, 2048], strides = [1, 1]} : vector<1x2176xf32> to vector<1x2048xf32>
    %24 = vector.extract_strided_slice %1 {offsets = [0, 65], sizes = [1, 2048], strides = [1, 1]} : vector<1x2176xf32> to vector<1x2048xf32>
    %25 = vector.extract_strided_slice %1 {offsets = [0, 66], sizes = [1, 2048], strides = [1, 1]} : vector<1x2176xf32> to vector<1x2048xf32>
    %26 = vector.extract_strided_slice %1 {offsets = [0, 67], sizes = [1, 2048], strides = [1, 1]} : vector<1x2176xf32> to vector<1x2048xf32>
    %27 = vector.extract_strided_slice %1 {offsets = [0, 68], sizes = [1, 2048], strides = [1, 1]} : vector<1x2176xf32> to vector<1x2048xf32>
    %28 = tpu.concatenate %3, %4, %5, %6, %7, %8, %9, %10 in 0 : vector<1x2048xf32>, vector<1x2048xf32>, vector<1x2048xf32>, vector<1x2048xf32>, vector<1x2048xf32>, vector<1x2048xf32>, vector<1x2048xf32>, vector<1x2048xf32> -> vector<8x2048xf32>
    %c0_2 = arith.constant 0 : index
    %c0_3 = arith.constant 0 : index
    %29 = vector.load %arg5[%c0_2, %c0_3] : memref<32x2048xf32, #tpu.memory_space<vmem>>, vector<8x2048xf32>
    tpu.vector_store %arg5[%c0_2, %c0_3], %28 {strides = array<i32>} : memref<32x2048xf32, #tpu.memory_space<vmem>>, vector<8x2048xf32>,
    %30 = tpu.concatenate %11, %12, %13, %14, %15, %16, %17, %18 in 0 : vector<1x2048xf32>, vector<1x2048xf32>, vector<1x2048xf32>, vector<1x2048xf32>, vector<1x2048xf32>, vector<1x2048xf32>, vector<1x2048xf32>, vector<1x2048xf32> -> vector<8x2048xf32>
    %c8 = arith.constant 8 : index
    %c0_4 = arith.constant 0 : index
    %31 = vector.load %arg5[%c8, %c0_4] : memref<32x2048xf32, #tpu.memory_space<vmem>>, vector<8x2048xf32>
    tpu.vector_store %arg5[%c8, %c0_4], %30 {strides = array<i32>} : memref<32x2048xf32, #tpu.memory_space<vmem>>, vector<8x2048xf32>,
    %32 = tpu.concatenate %19, %20, %21, %22, %23, %24, %25, %26 in 0 : vector<1x2048xf32>, vector<1x2048xf32>, vector<1x2048xf32>, vector<1x2048xf32>, vector<1x2048xf32>, vector<1x2048xf32>, vector<1x2048xf32>, vector<1x2048xf32> -> vector<8x2048xf32>
    %c16 = arith.constant 16 : index
    %c0_5 = arith.constant 0 : index
    %33 = vector.load %arg5[%c16, %c0_5] : memref<32x2048xf32, #tpu.memory_space<vmem>>, vector<8x2048xf32>
    tpu.vector_store %arg5[%c16, %c0_5], %32 {strides = array<i32>} : memref<32x2048xf32, #tpu.memory_space<vmem>>, vector<8x2048xf32>,
    %34 = tpu.concatenate %27, %2, %2, %2, %2, %2, %2, %2 in 0 : vector<1x2048xf32>, vector<1x2048xf32>, vector<1x2048xf32>, vector<1x2048xf32>, vector<1x2048xf32>, vector<1x2048xf32>, vector<1x2048xf32>, vector<1x2048xf32> -> vector<8x2048xf32>
    %c24 = arith.constant 24 : index
    %c0_6 = arith.constant 0 : index
    %35 = vector.load %arg5[%c24, %c0_6] : memref<32x2048xf32, #tpu.memory_space<vmem>>, vector<8x2048xf32>
    tpu.vector_store %arg5[%c24, %c0_6], %34 {strides = array<i32>} : memref<32x2048xf32, #tpu.memory_space<vmem>>, vector<8x2048xf32>,
    %c0_7 = arith.constant 0 : index
    %c0_8 = arith.constant 0 : index
    %36 = vector.load %arg2[%c0_7, %c0_8] : memref<20x32xf32, #tpu.memory_space<vmem>>, vector<20x32xf32>
    %c0_9 = arith.constant 0 : index
    %c0_10 = arith.constant 0 : index
    %37 = vector.load %arg5[%c0_9, %c0_10] : memref<32x2048xf32, #tpu.memory_space<vmem>>, vector<32x2048xf32>
    %cst_11 = arith.constant dense<0.000000e+00> : vector<20x2048xf32>
    %38 = tpu.matmul %36, %37, %cst_11 {dimension_numbers = #tpu.dot_dimension_numbers<[1], [0], [0], [1], [0, 0, 1, 1], [], []>} : vector<20x32xf32>, vector<32x2048xf32>, vector<20x2048xf32> -> vector<20x2048xf32>
    %c0_12 = arith.constant 0 : index
    %c0_13 = arith.constant 0 : index
    %39 = vector.load %arg3[%c0_12, %c0_13] : memref<20x1xf32, #tpu.memory_space<vmem>>, vector<20x1xf32>
    %40 = vector.broadcast %39 : vector<20x1xf32> to vector<20x2048xf32>
    %41 = arith.addf %38, %40 : vector<20x2048xf32>
    %cst_14 = arith.constant 0.000000e+00 : f32
    %42 = vector.broadcast %cst_14 : f32 to vector<20x2048xf32>
    %43 = arith.maximumf %41, %42 : vector<20x2048xf32>
    %c0_15 = arith.constant 0 : index
    %c0_16 = arith.constant 0 : index
    %c0_17 = arith.constant 0 : index
    %44 = vector.load %arg4[%c0_15, %c0_16, %c0_17] : memref<1x20x2048xf32, #tpu.memory_space<vmem>>, vector<1x20x2048xf32>
    %45 = vector.shape_cast %44 : vector<1x20x2048xf32> to vector<20x2048xf32>
    %46 = vector.shape_cast %43 : vector<20x2048xf32> to vector<1x20x2048xf32>
    tpu.vector_store %arg4[%c0_15, %c0_16, %c0_17], %46 {strides = array<i32>} : memref<1x20x2048xf32, #tpu.memory_space<vmem>>, vector<1x20x2048xf32>,
    return
  }
  func.func @transform_0(%arg0: i32) -> (i32, i32, i32) {
    %c0_i32 = arith.constant 0 : i32
    %c0_i32_0 = arith.constant 0 : i32
    %c0_i32_1 = arith.constant 0 : i32
    return %arg0, %c0_i32, %c0_i32_0 : i32, i32, i32
  }
  func.func @transform_1(%arg0: i32) -> (i32, i32) {
    %c0_i32 = arith.constant 0 : i32
    %c0_i32_0 = arith.constant 0 : i32
    %c0_i32_1 = arith.constant 0 : i32
    return %c0_i32, %c0_i32_0 : i32, i32
  }
  func.func @transform_2(%arg0: i32) -> (i32, i32) {
    %c0_i32 = arith.constant 0 : i32
    %c0_i32_0 = arith.constant 0 : i32
    %c0_i32_1 = arith.constant 0 : i32
    return %c0_i32, %c0_i32_0 : i32, i32
  }
  func.func @transform_3(%arg0: i32) -> (i32, i32, i32) {
    %c0_i32 = arith.constant 0 : i32
    %c0_i32_0 = arith.constant 0 : i32
    %c0_i32_1 = arith.constant 0 : i32
    return %arg0, %c0_i32, %c0_i32_0 : i32, i32, i32
  }
}

</mosaic_0001>

<bundles_post_ra>
// kernel: cnet_forward.1
= control target key start
LH: loop header
LB: loop body
LE: loop exit
PB: predicated region body
PF: predicated region fallthrough
CT: control target
= control target key end

     0   :  { %s3373_s12 = smov 0   ;;  %s5624_s0 = inlined_call_operand.vmem [shape: f32[2,1,2176], index: 0, kind: input, shape index: {}]   ;;  %s5625_s1 = inlined_call_operand.vmem [shape: f32[20,32], index: 1, kind: input, shape index: {}]   ;;  %s5626_s2 = inlined_call_operand.vmem [shape: f32[20,1], index: 2, kind: input, shape index: {}]   ;;  %s5627_s3 = inlined_call_operand.vmem [shape: f32[2,20,2048], index: 3, kind: output, shape index: {}]  }
   0x1 LB: > { %s2643_s13 = sadd.s32 4294967295, %s3335_s12   ;;  %p2647_p0 = scmp.ge.s32.totalorder %s3335_s12, 1  ;;  %s3335_s12 = sphi %s3373_s12, %s13_s12  }
   0x2   : > { %p136_p1 = scmp.lt.s32.totalorder %s3335_s12, 3 }
   0x4   : > { %p137_p2 = pnand %p2647_p0, %p136_p1 }
   0x6   : > { %140 = sbr.rel (%p137_p2) target bundleno = 704 (0x2c0), region = 32 }
   0xd   : > { %p159_p3 = scmp.lt.s32.totalorder %s2643_s13, 1  ;;  %v173_v0 = vlaneseq  ;;  %s3337_s18 = smov 127   ;;  %vm727_vm0 = vcmask 1040384   ;;  %vm744_vm1 = vcmask 1041408   ;;  %vm761_vm2 = vcmask 1042432  }
   0xe   : > { %s3338_s19 = smov 126   ;;  %s3339_s20 = smov 125   ;;  %vm778_vm3 = vcmask 1043456   ;;  %vm292_vm4 = vcmask 1039360   ;;  %vm795_vm5 = vcmask 1044480   ;;  %vm812_vm6 = vcmask 1045504  }
   0xf   : > { %s5929_s13 = smov (!%p159_p3, %s2643_s13), 1  ;;  %v174_v1 = vshrl.u32 %v173_v0, 7  ;;  %s3340_s21 = smov 115   ;;  %vm829_vm7 = vcmask 1046528   ;;  %vm359_vm8 = vcmask 1031168   ;;  %vm426_vm9 = vcmask 1022976  }
  0x10   : > { %s2740_s14 = smul.u32 17, %s5929_s13  ;;  %s3341_s22 = smov 114   ;;  %vm898_vm10 = vcmask 941056   ;;  %vm966_vm11 = vcmask 932864   ;;  %vm1034_vm12 = vcmask 924672   ;;  %vm560_vm13 = vcmask 916480  }
  0x11   : > { %v191_v2 = vsub.s32 4, %v174_v1  ;;  %v195_v3 = vsub.s32 5, %v174_v1  ;;  %v175_v4 = vsub.s32 0, %v174_v1  ;;  %v179_v5 = vsub.s32 1, %v174_v1  ;;  %s3342_s23 = smov 113   ;;  %s3343_s24 = smov 112  }
  0x12   : > { %v199_v6 = vsub.s32 6, %v174_v1  ;;  %v203_v7 = vsub.s32 7, %v174_v1  ;;  %v183_v8 = vsub.s32 2, %v174_v1  ;;  %v187_v9 = vsub.s32 3, %v174_v1  ;;  %s3387_s17 = scalar_lea.vmem %s5624_s0, %s2740_s14  ;;  %s3344_s25 = smov 111  }
  0x13   : > { %v168_v10 = vld [vmem:[%s3387_s17] sm:$0xff]  ;;  %v169_v15 = vld [vmem:[%s3387_s17 + $0x8] sm:$0xff]  ;;  %v3455_v36 = vld [vmem:[%s3387_s17 + $0x10] ss:$0 sm:$0xff]  ;;  %s3345_s26 = smov 99   ;;  %s3346_s27 = smov 110  }
  0x14   : > { %v3390_v11 = vrot.slane %v168_v10, %v191_v2  ;;  %v3392_v12 = vrot.slane %v168_v10, %v195_v3  ;;  %v3394_v13 = vrot.slane %v168_v10, %v175_v4  ;;  %v3396_v14 = vrot.slane %v168_v10, %v179_v5  ;;  %s3347_s28 = smov 124   ;;  %s3348_s29 = smov 109  }
  0x15   : > { %v3399_v16 = vrot.slane %v168_v10, %v199_v6  ;;  %v3401_v17 = vrot.slane %v168_v10, %v203_v7  ;;  %v3403_v18 = vrot.slane %v168_v10, %v183_v8  ;;  %v3405_v19 = vrot.slane %v168_v10, %v187_v9  ;;  %s3349_s30 = smov 79   ;;  %s3350_s4 = smov 60  }
  0x16   : > { %v2776_v20 = vpack.i.bf16 %v3392_v12, %v3390_v11  ;;  %v2766_v21 = vpack.i.bf16 %v3396_v14, %v3394_v13  ;;  %v3415_v23 = vrot.slane %v169_v15, %v183_v8  ;;  %v3417_v24 = vrot.slane %v169_v15, %v187_v9 }
  0x17   : > { %v3413_v22 = vpack.i.bf16 %v3401_v17, %v3399_v16  ;;  %v2771_v25 = vpack.i.bf16 %v3405_v19, %v3403_v18  ;;  %v3421_v26 = vrot.slane %v169_v15, %v175_v4  ;;  %v3423_v27 = vrot.slane %v169_v15, %v179_v5 }
  0x18   : > { %2777 = vrot.lane.b32.xlu1 %v2776_v20, %s3337_s18  ;;  %2767 = vrot.lane.b32.xlu0 %v2766_v21, %s3337_s18  ;;  %v3427_v28 = vpack.i.bf16 %v3417_v24, %v3415_v23  ;;  %v3429_v29 = vrot.slane %v169_v15, %v199_v6  ;;  %v3431_v30 = vrot.slane %v169_v15, %v203_v7  ;;  %v1515_v44 = vsel %vm727_vm0, %v3396_v14, 0.0 }
  0x19   : > { %5712 = vst [vmem:[#allocation3_spill] sm:$0xff] %v3413_v22  ;;  %v3436_v31 = vpack.i.bf16 %v3423_v27, %v3421_v26  ;;  %v3438_v32 = vrot.slane %v169_v15, %v191_v2  ;;  %v3440_v33 = vrot.slane %v169_v15, %v195_v3  ;;  %v3475_v37 = vpack.i.bf16 %v3403_v18, %v3396_v14 }
  0x1a   : > { %5713 = vst [vmem:[#allocation4_spill] sm:$0xff] %v3427_v28  ;;  %5714 = vst [vmem:[#allocation5_spill] sm:$0xff] %v3431_v30  ;;  %v3446_v34 = vpack.i.bf16 %v3431_v30, %v3429_v29  ;;  %v2891_v38 = vpack.i.bf16 %v3394_v13, %v3392_v12  ;;  %v3485_v39 = vpack.i.bf16 %v3390_v11, %v3405_v19  ;;  %v1516_v45 = vsel %vm727_vm0, %v3403_v18, 0.0 }
  0x1b   : > { %5715 = vst [vmem:[#allocation6_spill] sm:$0xff] %v3436_v31  ;;  %v3450_v35 = vpack.i.bf16 %v3440_v33, %v3438_v32  ;;  %v1532_v46 = vsel %vm744_vm1, %v1515_v44, 0.0  ;;  %v1517_v47 = vsel %vm727_vm0, %v3405_v19, 0.0  ;;  %v1518_v48 = vsel %vm727_vm0, %v3390_v11, 0.0 }
  0x1c   : > { %2782 = vrot.lane.b32.xlu1 %v3413_v22, %s3337_s18  ;;  %2772 = vrot.lane.b32.xlu0 %v2771_v25, %s3337_s18  ;;  %5716 = vst [vmem:[#allocation7_spill] sm:$0xff] %v3446_v34  ;;  %v1533_v51 = vsel %vm744_vm1, %v1516_v45, 0.0  ;;  %v1549_v52 = vsel %vm761_vm2, %v1532_v46, 0.0  ;;  %v1534_v53 = vsel %vm744_vm1, %v1517_v47, 0.0  ;;  %v1535_v54 = vsel %vm744_vm1, %v1518_v48, 0.0 }
  0x1d   : > { %5717 = vst [vmem:[#allocation8_spill] sm:$0xff] %v3450_v35  ;;  %v1550_v55 = vsel %vm761_vm2, %v1533_v51, 0.0  ;;  %v1566_v58 = vsel %vm778_vm3, %v1549_v52, 0.0  ;;  %v1551_v59 = vsel %vm761_vm2, %v1534_v53, 0.0  ;;  %v1552_v60 = vsel %vm761_vm2, %v1535_v54, 0.0 }
  0x1e   : > { %v1567_v61 = vsel %vm778_vm3, %v1550_v55, 0.0  ;;  %v1583_v0 = vsel %vm795_vm5, %v1566_v58, 0.0  ;;  %v1568_v1 = vsel %vm778_vm3, %v1551_v59, 0.0  ;;  %v1569_v2 = vsel %vm778_vm3, %v1552_v60, 0.0 }
  0x1f   : > { %v1584_v3 = vsel %vm795_vm5, %v1567_v61, 0.0  ;;  %v1600_v4 = vsel %vm812_vm6, %v1583_v0, 0.0  ;;  %v1585_v5 = vsel %vm795_vm5, %v1568_v1, 0.0  ;;  %v1586_v6 = vsel %vm795_vm5, %v1569_v2, 0.0 }
  0x20   : > { %2792 = vrot.lane.b32.xlu1 %v3427_v28, %s3337_s18  ;;  %2787 = vrot.lane.b32.xlu0 %v3436_v31, %s3337_s18  ;;  %v1519_v51 = vsel %vm727_vm0, %v3392_v12, 0.0  ;;  %vm627_vm14 = vcmask 908288   ;;  %vm1104_vm15 = vcmask 809984  }
  0x21   : > { %v1536_v2 = vsel %vm744_vm1, %v1519_v51, 0.0 }
  0x24   : > { %2802 = vrot.lane.b32.xlu1 %v3446_v34, %s3337_s18  ;;  %2797 = vrot.lane.b32.xlu0 %v3450_v35, %s3337_s18 }
  0x28   : > { %2807 = vrot.lane.b32.xlu1 %v2766_v21, %s3338_s19  ;;  %290 = vrot.lane.b32.xlu0 %v3455_v36, %s3337_s18 }
  0x2c   : > { %2817 = vrot.lane.b32.xlu1 %v2776_v20, %s3338_s19  ;;  %2812 = vrot.lane.b32.xlu0 %v2771_v25, %s3338_s19 }
  0x30   : > { %2827 = vrot.lane.b32.xlu1 %v3436_v31, %s3338_s19  ;;  %2822 = vrot.lane.b32.xlu0 %v3413_v22, %s3338_s19 }
  0x34   : > { %2837 = vrot.lane.b32.xlu1 %v3450_v35, %s3338_s19  ;;  %2832 = vrot.lane.b32.xlu0 %v3427_v28, %s3338_s19 }
  0x38   : > { %357 = vrot.lane.b32.xlu1 %v3455_v36, %s3338_s19  ;;  %2842 = vrot.lane.b32.xlu0 %v3446_v34, %s3338_s19  ;;  %s2741_s19 = smul.u32 384, %s5929_s13 }
  0x3c   : > { %2852 = vrot.lane.b32.xlu1 %v2771_v25, %s3339_s20  ;;  %2847 = vrot.lane.b32.xlu0 %v2766_v21, %s3339_s20  ;;  %v1602_v25 = vsel %vm812_vm6, %v1585_v5, 0.0 }
  0x3d   : > { %v3643_v54 = vsel %vm829_vm7, %v1602_v25, 0.0 }
  0x3e   : > { %5719 = vst [vmem:[#allocation10_spill] sm:$0xff] %v3643_v54 }
  0x40   : > { %2862 = vrot.lane.b32.xlu1 %v3413_v22, %s3339_s20  ;;  %2857 = vrot.lane.b32.xlu0 %v2776_v20, %s3339_s20  ;;  %v1601_v20 = vsel %vm812_vm6, %v1584_v3, 0.0 }
  0x41   : > { %v3628_v44 = vsel %vm829_vm7, %v1601_v20, 0.0 }
  0x44   : > { %2872 = vrot.lane.b32.xlu1 %v3427_v28, %s3339_s20  ;;  %2867 = vrot.lane.b32.xlu0 %v3436_v31, %s3339_s20 }
  0x48   : > { %2882 = vrot.lane.b32.xlu1 %v3475_v37, %s3340_s21  ;;  %2877 = vrot.lane.b32.xlu0 %v3450_v35, %s3339_s20 }
  0x4c   : > { %2892 = vrot.lane.b32.xlu1 %v2891_v38, %s3340_s21  ;;  %2887 = vrot.lane.b32.xlu0 %v3485_v39, %s3340_s21 }
  0x50   : > { %2902 = vrot.lane.b32.xlu1 %v3485_v39, %s3341_s22  ;;  %2897 = vrot.lane.b32.xlu0 %v3475_v37, %s3341_s22 }
  0x54   : > { %2912 = vrot.lane.b32.xlu1 %v3475_v37, %s3342_s23  ;;  %2907 = vrot.lane.b32.xlu0 %v2891_v38, %s3341_s22 }
  0x58   : > { %2922 = vrot.lane.b32.xlu1 %v2891_v38, %s3342_s23  ;;  %2917 = vrot.lane.b32.xlu0 %v3485_v39, %s3342_s23 }
  0x5c   : > { %2932 = vrot.lane.b32.xlu1 %v3485_v39, %s3343_s24  ;;  %2927 = vrot.lane.b32.xlu0 %v3475_v37, %s3343_s24 }
  0x60   : > { %2942 = vrot.lane.b32.xlu1 %v3475_v37, %s3344_s25  ;;  %2937 = vrot.lane.b32.xlu0 %v2891_v38, %s3343_s24 }
  0x64   : > { %2952 = vrot.lane.b32.xlu1 %v2891_v38, %s3344_s25  ;;  %2947 = vrot.lane.b32.xlu0 %v3485_v39, %s3344_s25 }
  0x68   : > { %2962 = vrot.lane.b32.xlu1 %v3485_v39, %s3345_s26  ;;  %2957 = vrot.lane.b32.xlu0 %v3475_v37, %s3345_s26 }
  0x6c   : > { %2972 = vrot.lane.b32.xlu1 %v3475_v37, %s3346_s27  ;;  %2967 = vrot.lane.b32.xlu0 %v2891_v38, %s3345_s26 }
  0x70   : > { %2982 = vrot.lane.b32.xlu1 %v2891_v38, %s3346_s27  ;;  %2977 = vrot.lane.b32.xlu0 %v3485_v39, %s3346_s27  ;;  %v1603_v38 = vsel %vm812_vm6, %v1586_v6, 0.0 }
  0x71   : > { %v3646_v55 = vsel %vm829_vm7, %v1603_v38, 0.0 }
  0x72   : > { %5720 = vst [vmem:[#allocation11_spill] sm:$0xff] %v3646_v55 }
  0x74   : > { %2992 = vrot.lane.b32.xlu1 %v3436_v31, %s3340_s21  ;;  %2987 = vrot.lane.b32.xlu0 %v3413_v22, %s3340_s21 }
  0x78   : > { %3002 = vrot.lane.b32.xlu1 %v3436_v31, %s3341_s22  ;;  %2997 = vrot.lane.b32.xlu0 %v3413_v22, %s3341_s22 }
  0x7c   : > { %3012 = vrot.lane.b32.xlu1 %v3436_v31, %s3342_s23  ;;  %3007 = vrot.lane.b32.xlu0 %v3413_v22, %s3342_s23 }
  0x80   : > { %3022 = vrot.lane.b32.xlu1 %v3436_v31, %s3343_s24  ;;  %3017 = vrot.lane.b32.xlu0 %v3413_v22, %s3343_s24 }
  0x84   : > { %3032 = vrot.lane.b32.xlu1 %v3436_v31, %s3344_s25  ;;  %3027 = vrot.lane.b32.xlu0 %v3413_v22, %s3344_s25 }
  0x88   : > { %3042 = vrot.lane.b32.xlu1 %v3436_v31, %s3345_s26  ;;  %3037 = vrot.lane.b32.xlu0 %v3413_v22, %s3345_s26 }
  0x8a   : > { %v3544_v40 = vpop.permute.xlu1 %2777  ;;  %v3546_v41 = vpop.permute.xlu0 %2767 }
  0x8b   : > { %v2780_v7 = vunpack.i.h.bf16 %v3544_v40  ;;  %v2770_v8 = vunpack.i.h.bf16 %v3546_v41  ;;  %v2769_v9 = vunpack.i.l.bf16 %v3546_v41  ;;  %v2779_v21 = vunpack.i.l.bf16 %v3544_v40 }
  0x8c   : > { %3052 = vrot.lane.b32.xlu1 %v3436_v31, %s3346_s27  ;;  %3047 = vrot.lane.b32.xlu0 %v3413_v22, %s3346_s27  ;;  %v3625_v41 = vsel %vm829_vm7, %v1600_v4, 0.0  ;;  %v1514_v40 = vsel %vm727_vm0, %v3394_v13, 0.0 }
  0x8d   : > { %v297_v45 = vsel %vm292_vm4, %v2779_v21, %v2780_v7  ;;  %v293_v46 = vsel %vm292_vm4, %v2769_v9, %v2770_v8  ;;  %v1531_v60 = vsel %vm744_vm1, %v1514_v40, 0.0 }
  0x8e   : > { %v3552_v42 = vpop.permute.xlu1 %2782  ;;  %v3554_v43 = vpop.permute.xlu0 %2772  ;;  %v3659_v61 = vsel %vm727_vm0, %v3390_v11, %v297_v45  ;;  %v3666_v3 = vsel %vm727_vm0, %v3394_v13, %v293_v46  ;;  %v1548_v45 = vsel %vm761_vm2, %v1531_v60, 0.0 }
  0x8f   : > { %v2784_v0 = vunpack.i.l.bf16 %v3552_v42  ;;  %v2775_v1 = vunpack.i.h.bf16 %v3554_v43  ;;  %v2774_v4 = vunpack.i.l.bf16 %v3554_v43  ;;  %v2785_v20 = vunpack.i.h.bf16 %v3552_v42 }
  0x90   : > { %3062 = vrot.lane.b32.xlu1 %v3450_v35, %s3340_s21  ;;  %3057 = vrot.lane.b32.xlu0 %v3427_v28, %s3340_s21  ;;  %v1553_v42 = vsel %vm761_vm2, %v1536_v2, 0.0 }
  0x91   : > { %v299_v46 = vsel %vm292_vm4, %v2784_v0, %v2785_v20  ;;  %v296_v51 = vsel %vm292_vm4, %v2775_v1, %v2779_v21  ;;  %v294_v59 = vsel %vm292_vm4, %v2770_v8, %v2774_v4 }
  0x92   : > { %v3569_v49 = vpop.permute.xlu1 %2792  ;;  %v3571_v50 = vpop.permute.xlu0 %2787 }
  0x93   : > { %v2790_v21 = vunpack.i.h.bf16 %v3571_v50 }
  0x94   : > { %3072 = vrot.lane.b32.xlu1 %v3450_v35, %s3341_s22  ;;  %3067 = vrot.lane.b32.xlu0 %v3427_v28, %s3341_s22 }
  0x96   : > { %v3582_v56 = vpop.permute.xlu1 %2802  ;;  %v3584_v57 = vpop.permute.xlu0 %2797 }
  0x97   : > { %v2800_v52 = vunpack.i.h.bf16 %v3584_v57  ;;  %v5628_v53 = vunpack.i.l.bf16 %v3584_v57  ;;  %v2804_v5 = vunpack.i.l.bf16 %v3582_v56  ;;  %v2805_v25 = vunpack.i.h.bf16 %v3582_v56 }
  0x98   : > { %3082 = vrot.lane.b32.xlu1 %v3450_v35, %s3342_s23  ;;  %3077 = vrot.lane.b32.xlu0 %v3427_v28, %s3342_s23  ;;  %v298_v56 = vsel %vm292_vm4, %v2780_v7, %v2784_v0  ;;  %v2794_v0 = vunpack.i.l.bf16 %v3569_v49 }
  0x99   : > { %v305_v38 = vsel %vm292_vm4, %v5628_v53, %v2800_v52  ;;  %v307_v11 = vsel %vm292_vm4, %v2804_v5, %v2805_v25  ;;  %v306_v58 = vsel %vm292_vm4, %v2800_v52, %v2804_v5  ;;  %v2789_v5 = vunpack.i.l.bf16 %v3571_v50 }
  0x9a   : > { %v3594_v62 = vpop.permute.xlu1 %2807  ;;  %v3596_v63 = vpop.permute.xlu0 %290  ;;  %v3697_v53 = vsel %vm727_vm0, %v3438_v32, %v305_v38  ;;  %v3715_v38 = vsel %vm727_vm0, %v3429_v29, %v307_v11  ;;  %v1570_v50 = vsel %vm778_vm3, %v1553_v42, 0.0  ;;  %v1520_v11 = vsel %vm727_vm0, %v3399_v16, 0.0 }
  0x9b   : > { %5718 = vst [vmem:[#allocation9_spill] sm:$0xff] %v3596_v63  ;;  %5721 = vst [vmem:[#allocation12_spill] sm:$0xff] %v3697_v53  ;;  %v308_v8 = vsel %vm292_vm4, %v2805_v25, %v3596_v63  ;;  %v3723_v25 = vsel %vm727_vm0, %v3440_v33, %v306_v58 }
  0x9c   : > { %3092 = vrot.lane.b32.xlu1 %v3450_v35, %s3343_s24  ;;  %3087 = vrot.lane.b32.xlu0 %v3427_v28, %s3343_s24  ;;  %5724 = vst [vmem:[#allocation15_spill] sm:$0xff] %v3715_v38  ;;  %5725 = vst [vmem:[#allocation16_spill] sm:$0xff] %v3723_v25 }
  0x9e   : > { %v3612_v10 = vpop.permute.xlu1 %2817  ;;  %v3614_v15 = vpop.permute.xlu0 %2812 }
  0xa0   : > { %3102 = vrot.lane.b32.xlu1 %v3450_v35, %s3344_s25  ;;  %3097 = vrot.lane.b32.xlu0 %v3427_v28, %s3344_s25 }
  0xa2   : > { %v3634_v47 = vpop.permute.xlu1 %2827  ;;  %v3636_v48 = vpop.permute.xlu0 %2822 }
  0xa4   : > { %3112 = vrot.lane.b32.xlu1 %v3450_v35, %s3345_s26  ;;  %3107 = vrot.lane.b32.xlu0 %v3427_v28, %s3345_s26 }
  0xa6   : > { %v3670_v6 = vpop.permute.xlu1 %2837  ;;  %v3672_v9 = vpop.permute.xlu0 %2832 }
  0xa7   : > { %v2840_v40 = vunpack.i.h.bf16 %v3670_v6  ;;  %v5629_v43 = vunpack.i.l.bf16 %v3670_v6 }
  0xa8   : > { %3122 = vrot.lane.b32.xlu1 %v3450_v35, %s3346_s27  ;;  %3117 = vrot.lane.b32.xlu0 %v3427_v28, %s3346_s27 }
  0xa9   : > { %v372_v60 = vsel %vm359_vm8, %v5629_v43, %v2840_v40 }
  0xaa   : > { %v3702_v2 = vpop.permute.xlu1 %357  ;;  %v2843_v7 = vpop.permute.xlu0 %2842  ;;  %v3710_v52 = vsel %vm744_vm1, %v3697_v53, %v372_v60  ;;  %v1565_v60 = vsel %vm778_vm3, %v1548_v45, 0.0 }
  0xab   : > { %5722 = vst [vmem:[#allocation13_spill] sm:$0xff] %v3702_v2  ;;  %5723 = vst [vmem:[#allocation14_spill] sm:$0xff] %v3710_v52  ;;  %v2845_v43 = vunpack.i.h.bf16 %v2843_v7  ;;  %v2844_v35 = vunpack.i.l.bf16 %v2843_v7  ;;  %v3731_v7 = vsel %vm727_vm0, %v3431_v30, %v308_v8  ;;  %v2835_v30 = vunpack.i.h.bf16 %v3672_v9 }
  0xac   : > { %896 = vrot.lane.b32.xlu1 %v3455_v36, %s3340_s21  ;;  %3127 = vrot.lane.b32.xlu0 %v3446_v34, %s3340_s21  ;;  %5726 = vst [vmem:[#allocation17_spill] sm:$0xff] %v3731_v7 }
  0xad   : > { %v375_v63 = vsel %vm359_vm8, %v2845_v43, %v3702_v2  ;;  %v373_v53 = vsel %vm359_vm8, %v2840_v40, %v2844_v35  ;;  %v374_v52 = vsel %vm359_vm8, %v2844_v35, %v2845_v43  ;;  %v1521_v40 = vsel %vm727_vm0, %v3401_v17, 0.0 }
  0xae   : > { %v3737_v58 = vpop.permute.xlu1 %2852  ;;  %v3739_v28 = vpop.permute.xlu0 %2847  ;;  %v3743_v45 = vsel %vm744_vm1, %v3731_v7, %v375_v63  ;;  %v3747_v42 = vsel %vm744_vm1, %v3723_v25, %v373_v53  ;;  %v3751_v8 = vsel %vm744_vm1, %v3715_v38, %v374_v52  ;;  %v3757_v35 = vsel %vm727_vm0, %v3392_v12, %v298_v56 }
  0xaf   : > { %5727 = vst [vmem:[#allocation18_spill] sm:$0xff] %v3743_v45  ;;  %5728 = vst [vmem:[#allocation19_spill] sm:$0xff] %v3747_v42  ;;  %v2795_v43 = vunpack.i.h.bf16 %v3569_v49  ;;  %v1582_v63 = vsel %vm795_vm5, %v1565_v60, 0.0  ;;  %v1587_v53 = vsel %vm795_vm5, %v1570_v50, 0.0  ;;  %v3768_v52 = vsel %vm727_vm0, %v3399_v16, %v299_v46 }
  0xb0   : > { %5729 = vst [vmem:[#allocation20_spill] sm:$0xff] %v3751_v8  ;;  %5730 = vst [vmem:[#allocation21_spill] sm:$0xff] %v3757_v35  ;;  %964 = vrot.lane.b32.xlu1 %v3455_v36, %s3341_s22  ;;  %3132 = vrot.lane.b32.xlu0 %v3446_v34, %s3341_s22  ;;  %v3772_v56 = vsel %vm727_vm0, %v3405_v19, %v296_v51  ;;  %v295_v49 = vsel %vm292_vm4, %v2774_v4, %v2775_v1  ;;  %v1537_v2 = vsel %vm744_vm1, %v1520_v11, 0.0  ;;  %s5522_s22 = scalar_lea.vmem %s5627_s3, %s2741_s19 }
  0xb1   : > { %5731 = vst [vmem:[#allocation22_spill] sm:$0xff] %v3768_v52  ;;  %v3778_v8 = vsel %vm727_vm0, %v3396_v14, %v294_v59  ;;  %v303_v60 = vsel %vm292_vm4, %v2794_v0, %v2795_v43  ;;  %v302_v50 = vsel %vm292_vm4, %v2790_v21, %v2794_v0  ;;  %v1538_v46 = vsel %vm744_vm1, %v1521_v40, 0.0 }
  0xb2   : > { %v3782_v42 = vpop.permute.xlu1 %2862  ;;  %v3784_v16 = vpop.permute.xlu0 %2857  ;;  %v300_v19 = vsel %vm292_vm4, %v2785_v20, %v2789_v5  ;;  %v301_v1 = vsel %vm292_vm4, %v2789_v5, %v2790_v21  ;;  %v1599_v4 = vsel %vm812_vm6, %v1582_v63, 0.0  ;;  %v1604_v51 = vsel %vm812_vm6, %v1587_v53, 0.0 }
  0xb3   : > { %v5732_v14 = vunpack.i.l.bf16 %v3584_v57  ;;  %v2810_v0 = vunpack.i.h.bf16 %v3594_v62  ;;  %v2809_v11 = vunpack.i.l.bf16 %v3594_v62  ;;  %v1554_v20 = vsel %vm761_vm2, %v1537_v2, 0.0 }
  0xb4   : > { %1032 = vrot.lane.b32.xlu1 %v3455_v36, %s3342_s23  ;;  %3137 = vrot.lane.b32.xlu0 %v3446_v34, %s3342_s23  ;;  %v2820_v21 = vunpack.i.h.bf16 %v3612_v10  ;;  %v2819_v5 = vunpack.i.l.bf16 %v3612_v10  ;;  %v2815_v57 = vunpack.i.h.bf16 %v3614_v15  ;;  %v1555_v40 = vsel %vm761_vm2, %v1538_v46, 0.0 }
  0xb5   : > { %v304_v59 = vsel %vm292_vm4, %v2795_v43, %v5732_v14  ;;  %v3807_v43 = vsel %vm727_vm0, %v3403_v18, %v295_v49  ;;  %v3814_v53 = vsel %vm829_vm7, %v1599_v4, 0.0  ;;  %v3817_v2 = vsel %vm829_vm7, %v1604_v51, 0.0 }
  0xb6   : > { %v3809_v62 = vpop.permute.xlu1 %2872  ;;  %v3811_v63 = vpop.permute.xlu0 %2867  ;;  %5733 = vst [vmem:[#allocation23_spill] sm:$0xff] %v3814_v53  ;;  %5734 = vst [vmem:[#allocation24_spill] sm:$0xff] %v3817_v2  ;;  %v3821_v10 = vsel %vm727_vm0, %v3415_v23, %v303_v60  ;;  %v3825_v46 = vsel %vm727_vm0, %v3423_v27, %v302_v50  ;;  %v2814_v18 = vunpack.i.l.bf16 %v3614_v15  ;;  %v1571_v49 = vsel %vm778_vm3, %v1554_v20, 0.0 }
  0xb7   : > { %5735 = vst [vmem:[#allocation25_spill] sm:$0xff] %v3821_v10  ;;  %5736 = vst [vmem:[#allocation26_spill] sm:$0xff] %v3825_v46  ;;  %v3831_v14 = vsel %vm727_vm0, %v3401_v17, %v300_v19  ;;  %v3835_v4 = vsel %vm727_vm0, %v3421_v26, %v301_v1  ;;  %v3839_v60 = vsel %vm727_vm0, %v3417_v24, %v304_v59  ;;  %v1572_v15 = vsel %vm778_vm3, %v1555_v40, 0.0 }
  0xb8   : > { %5737 = vst [vmem:[#allocation27_spill] sm:$0xff] %v3831_v14  ;;  %5738 = vst [vmem:[#allocation28_spill] sm:$0xff] %v3835_v4  ;;  %558 = vrot.lane.b32.xlu1 %v3455_v36, %s3343_s24  ;;  %3142 = vrot.lane.b32.xlu0 %v3446_v34, %s3343_s24  ;;  %v360_v50 = vsel %vm359_vm8, %v2809_v11, %v2810_v0  ;;  %v364_v17 = vsel %vm359_vm8, %v2819_v5, %v2820_v21  ;;  %v2830_v51 = vunpack.i.h.bf16 %v3634_v47  ;;  %vm694_vm4 = vcmask 900096  }
  0xb9   : > { %5739 = vst [vmem:[#allocation29_spill] sm:$0xff] %v3839_v60  ;;  %v363_v19 = vsel %vm359_vm8, %v2815_v57, %v2819_v5  ;;  %v2829_v59 = vunpack.i.l.bf16 %v3634_v47  ;;  %v1588_v38 = vsel %vm795_vm5, %v1571_v49, 0.0  ;;  %v1524_v11 = vsel %vm727_vm0, %v3415_v23, 0.0 }
  0xba   : > { %v3853_v20 = vpop.permute.xlu1 %2882  ;;  %v3855_v45 = vpop.permute.xlu0 %2877  ;;  %v361_v40 = vsel %vm359_vm8, %v2810_v0, %v2814_v18  ;;  %v2825_v5 = vunpack.i.h.bf16 %v3636_v48  ;;  %v2824_v25 = vunpack.i.l.bf16 %v3636_v48  ;;  %v1589_v1 = vsel %vm795_vm5, %v1572_v15, 0.0 }
  0xbb   : > { %v3866_v47 = vsel %vm744_vm1, %v3666_v3, %v360_v50  ;;  %v3870_v7 = vsel %vm744_vm1, %v3659_v61, %v364_v17  ;;  %v1525_v23 = vsel %vm727_vm0, %v3417_v24, 0.0  ;;  %v362_v48 = vsel %vm359_vm8, %v2814_v18, %v2815_v57 }
  0xbc   : > { %625 = vrot.lane.b32.xlu1 %v3455_v36, %s3344_s25  ;;  %3147 = vrot.lane.b32.xlu0 %v3446_v34, %s3344_s25  ;;  %v3881_v0 = vsel %vm744_vm1, %v3772_v56, %v363_v19  ;;  %v1605_v49 = vsel %vm812_vm6, %v1588_v38, 0.0  ;;  %v1541_v15 = vsel %vm744_vm1, %v1524_v11, 0.0  ;;  %v3887_v50 = vsel %vm744_vm1, %v3778_v8, %v361_v40 }
  0xbd   : > { %v368_v17 = vsel %vm359_vm8, %v2829_v59, %v2830_v51  ;;  %v1606_v18 = vsel %vm812_vm6, %v1589_v1, 0.0  ;;  %v365_v19 = vsel %vm359_vm8, %v2820_v21, %v2824_v25  ;;  %v366_v38 = vsel %vm359_vm8, %v2824_v25, %v2825_v5 }
  0xbe   : > { %v3891_v24 = vpop.permute.xlu1 %2892  ;;  %v3893_v57 = vpop.permute.xlu0 %2887  ;;  %v2834_v11 = vunpack.i.l.bf16 %v3672_v9  ;;  %v1542_v31 = vsel %vm744_vm1, %v1525_v23, 0.0  ;;  %v747_v40 = vsel %vm744_vm1, %v3807_v43, %v362_v48  ;;  %v3907_v53 = vsel %vm829_vm7, %v1605_v49, 0.0 }
  0xbf   : > { %5740 = vst [vmem:[#allocation30_spill] sm:$0xff] %v3907_v53  ;;  %v1558_v21 = vsel %vm761_vm2, %v1541_v15, 0.0  ;;  %v1522_v25 = vsel %vm727_vm0, %v3421_v26, 0.0  ;;  %v3914_v9 = vsel %vm744_vm1, %v3835_v4, %v368_v17  ;;  %v367_v1 = vsel %vm359_vm8, %v2825_v5, %v2829_v59 }
  0xc0   : > { %424 = vrot.lane.b32.xlu1 %v3455_v36, %s3339_s20  ;;  %3152 = vrot.lane.b32.xlu0 %v3446_v34, %s3339_s20  ;;  %v3918_v23 = vsel %vm829_vm7, %v1606_v18, 0.0  ;;  %v1523_v48 = vsel %vm727_vm0, %v3423_v27, 0.0  ;;  %v3924_v49 = vsel %vm744_vm1, %v3757_v35, %v365_v19  ;;  %v751_v15 = vsel %vm744_vm1, %v3768_v52, %v366_v38 }
  0xc1   : > { %5741 = vst [vmem:[#allocation31_spill] sm:$0xff] %v3918_v23  ;;  %v5742_v26 = vunpack.i.l.bf16 %v3670_v6  ;;  %v1559_v5 = vsel %vm761_vm2, %v1542_v31, 0.0  ;;  %v369_v18 = vsel %vm359_vm8, %v2830_v51, %v2834_v11  ;;  %v370_v27 = vsel %vm359_vm8, %v2834_v11, %v2835_v30 }
  0xc2   : > { %v3931_v2 = vpop.permute.xlu1 %2902  ;;  %v3933_v59 = vpop.permute.xlu0 %2897  ;;  %v1575_v19 = vsel %vm778_vm3, %v1558_v21, 0.0  ;;  %v1539_v54 = vsel %vm744_vm1, %v1522_v25, 0.0  ;;  %v2855_v38 = vunpack.i.h.bf16 %v3737_v58  ;;  %v2854_v6 = vunpack.i.l.bf16 %v3737_v58 }
  0xc3   : > { %v371_v17 = vsel %vm359_vm8, %v2835_v30, %v5742_v26  ;;  %v2850_v26 = vunpack.i.h.bf16 %v3739_v28  ;;  %v1540_v31 = vsel %vm744_vm1, %v1523_v48, 0.0  ;;  %v2849_v30 = vunpack.i.l.bf16 %v3739_v28 }
  0xc4   : > { %1102 = vrot.lane.b32.xlu1 %v3455_v36, %s3345_s26  ;;  %3157 = vrot.lane.b32.xlu0 %v3446_v34, %s3345_s26  ;;  %v2864_v11 = vunpack.i.l.bf16 %v3782_v42  ;;  %v1576_v21 = vsel %vm778_vm3, %v1559_v5, 0.0  ;;  %v3954_v58 = vsel %vm744_vm1, %v3831_v14, %v367_v1  ;;  %v3958_v25 = vsel %vm744_vm1, %v3825_v46, %v369_v18 }
  0xc5   : > { %v1592_v48 = vsel %vm795_vm5, %v1575_v19, 0.0  ;;  %v3969_v5 = vsel %vm744_vm1, %v3821_v10, %v370_v27  ;;  %v3973_v1 = vsel %vm744_vm1, %v3839_v60, %v371_v17  ;;  %v2860_v18 = vunpack.i.h.bf16 %v3784_v16 }
  0xc6   : > { %v3960_v55 = vpop.permute.xlu1 %2912  ;;  %v3962_v22 = vpop.permute.xlu0 %2907  ;;  %v2859_v51 = vunpack.i.l.bf16 %v3784_v16  ;;  %v429_v46 = vsel %vm426_vm9, %v2854_v6, %v2855_v38  ;;  %v1593_v27 = vsel %vm795_vm5, %v1576_v21, 0.0  ;;  %v1556_v19 = vsel %vm761_vm2, %v1539_v54, 0.0 }
  0xc7   : > { %v1557_v17 = vsel %vm761_vm2, %v1540_v31, 0.0  ;;  %v428_v28 = vsel %vm426_vm9, %v2850_v26, %v2854_v6  ;;  %v427_v53 = vsel %vm426_vm9, %v2849_v30, %v2850_v26  ;;  %v5743_v16 = vunpack.i.h.bf16 %v3782_v42 }
  0xc8   : > { %692 = vrot.lane.b32.xlu1 %v3455_v36, %s3346_s27  ;;  %3162 = vrot.lane.b32.xlu0 %v3446_v34, %s3346_s27  ;;  %v1609_v36 = vsel %vm812_vm6, %v1592_v48, 0.0  ;;  %v2885_v60 = vunpack.i.h.bf16 %v3853_v20  ;;  %v2890_v54 = vunpack.i.h.bf16 %v3893_v57  ;;  %v4000_v26 = vsel %vm761_vm2, %v747_v40, %v429_v46 }
  0xc9   : > { %v433_v23 = vsel %vm426_vm9, %v2864_v11, %v5743_v16  ;;  %v430_v30 = vsel %vm426_vm9, %v2855_v38, %v2859_v51  ;;  %v431_v16 = vsel %vm426_vm9, %v2859_v51, %v2860_v18  ;;  %v2889_v48 = vunpack.i.l.bf16 %v3893_v57 }
  0xca   : > { %v3995_v31 = vpop.permute.xlu1 %2922  ;;  %v3997_v6 = vpop.permute.xlu0 %2917  ;;  %v4007_v34 = vsel %vm761_vm2, %v3866_v47, %v427_v53  ;;  %v4011_v21 = vsel %vm761_vm2, %v3887_v50, %v428_v28  ;;  %v4018_v46 = vsel %vm812_vm6, %v1593_v27, 0.0  ;;  %v4021_v57 = vsel %vm829_vm7, %v1609_v36, 0.0 }
  0xcb   : > { %5744 = vst [vmem:[#allocation32_spill] sm:$0xff] %v4007_v34  ;;  %5745 = vst [vmem:[#allocation33_spill] sm:$0xff] %v4018_v46  ;;  %v4024_v53 = vsel %vm761_vm2, %v751_v15, %v433_v23  ;;  %v432_v47 = vsel %vm426_vm9, %v2860_v18, %v2864_v11  ;;  %v4028_v50 = vsel %vm778_vm3, %v1556_v19, 0.0  ;;  %v4031_v40 = vsel %vm778_vm3, %v1557_v17, 0.0 }
  0xcc   : > { %3172 = vrot.lane.b32.xlu1 %v3485_v39, %s3347_s28  ;;  %3167 = vrot.lane.b32.xlu0 %v3475_v37, %s3347_s28  ;;  %5746 = vst [vmem:[#allocation34_spill] sm:$0xff] %v4021_v57  ;;  %5747 = vst [vmem:[#allocation35_spill] sm:$0xff] %v4024_v53  ;;  %v4035_v37 = vsel %vm761_vm2, %v3881_v0, %v430_v30  ;;  %v4039_v39 = vsel %vm761_vm2, %v3870_v7, %v431_v16  ;;  %v5749_v38 = vunpack.i.l.bf16 %v3853_v20  ;;  %vm1465_vm8 = vcmask 646144  }
  0xcd   : > { %5748 = vst [vmem:[#allocation36_spill] sm:$0xff] %v4039_v39  ;;  %v5750_v15 = vunpack.i.l.bf16 %v3891_v24  ;;  %v901_v0 = vsel %vm898_vm10, %v2885_v60, %v2889_v48  ;;  %v902_v18 = vsel %vm898_vm10, %v2889_v48, %v2890_v54  ;;  %v2905_v7 = vunpack.i.h.bf16 %v3931_v2 }
  0xce   : > { %v900_v23 = vsel %vm898_vm10, %v5749_v38, %v2885_v60  ;;  %v4047_v11 = vpop.permute.xlu1 %2932  ;;  %v4049_v28 = vpop.permute.xlu0 %2927  ;;  %v2904_v27 = vunpack.i.l.bf16 %v3931_v2  ;;  %v2900_v19 = vunpack.i.h.bf16 %v3933_v59  ;;  %v5650_v17 = vunpack.i.l.bf16 %v3933_v59 }
  0xcf   : > { %v903_v51 = vsel %vm898_vm10, %v2890_v54, %v5750_v15  ;;  %v2915_v36 = vunpack.i.h.bf16 %v3960_v55  ;;  %v5751_v16 = vpack.i.bf16 %v3392_v12, %v3394_v13  ;;  %v4065_v60 = vsel %vm761_vm2, %v3924_v49, %v432_v47 }
  0xd0   : > { %5752 = vst [vmem:[#allocation37_spill] sm:$0xff] %v4065_v60  ;;  %v5651_v48 = vunpack.i.l.bf16 %v3962_v22  ;;  %v1140_v30 = vsel %vm744_vm1, %v3778_v8, %v900_v23  ;;  %v2919_v12 = vunpack.i.l.bf16 %v3997_v6  ;;  %v1143_v49 = vsel %vm744_vm1, %v3659_v61, %v903_v51 }
  0xd1   : > { %3177 = vrot.lane.b32.xlu0 %v5751_v16, %s3347_s28  ;;  %v1141_v47 = vsel %vm744_vm1, %v3807_v43, %v901_v0  ;;  %v1142_v38 = vsel %vm744_vm1, %v3772_v56, %v902_v18  ;;  %v970_v15 = vsel %vm966_vm11, %v2904_v27, %v2905_v7  ;;  %v969_v8 = vsel %vm966_vm11, %v2900_v19, %v2904_v27 }
  0xd2   : > { %v4075_v13 = vpop.permute.xlu1 %2942  ;;  %v4077_v16 = vpop.permute.xlu0 %2937  ;;  %v968_v23 = vsel %vm966_vm11, %v5650_v17, %v2900_v19  ;;  %v5753_v54 = vunpack.i.l.bf16 %v3960_v55  ;;  %v2920_v61 = vunpack.i.h.bf16 %v3997_v6  ;;  %v971_v56 = vsel %vm966_vm11, %v2905_v7, %v5651_v48 }
  0xd3   : > { %v2934_v51 = vunpack.i.l.bf16 %v4047_v11  ;;  %v2930_v0 = vunpack.i.h.bf16 %v4049_v28  ;;  %v1159_v18 = vsel %vm761_vm2, %v1142_v38, %v970_v15  ;;  %v1037_v27 = vsel %vm1034_vm12, %v2915_v36, %v2919_v12 }
  0xd4   : > { %v4093_v2 = vsel %vm1034_vm12, %v5753_v54, %v2915_v36  ;;  %v1157_v57 = vsel %vm761_vm2, %v1140_v30, %v968_v23  ;;  %v1158_v7 = vsel %vm761_vm2, %v1141_v47, %v969_v8  ;;  %v2945_v48 = vunpack.i.h.bf16 %v4075_v13 }
  0xd5   : > { %v1174_v38 = vsel %vm778_vm3, %v1157_v57, %v4093_v2  ;;  %v1160_v36 = vsel %vm761_vm2, %v1143_v49, %v971_v56  ;;  %v4116_v15 = vsel %vm1034_vm12, %v2919_v12, %v2920_v61  ;;  %v2935_v54 = vunpack.i.h.bf16 %v4047_v11 }
  0xd6   : > { %v4106_v17 = vpop.permute.xlu1 %2952  ;;  %v2948_v6 = vpop.permute.xlu0 %2947  ;;  %v5754_v19 = vunpack.i.l.bf16 %v3995_v31  ;;  %v1175_v47 = vsel %vm778_vm3, %v1158_v7, %v1037_v27  ;;  %v4126_v8 = vsel %vm560_vm13, %v2930_v0, %v2934_v51  ;;  %v5755_v57 = vunpack.i.l.bf16 %v4049_v28 }
  0xd7   : > { %v2949_v23 = vunpack.i.l.bf16 %v2948_v6  ;;  %v5756_v12 = vunpack.i.l.bf16 %v4077_v16  ;;  %v2950_v56 = vunpack.i.h.bf16 %v2948_v6  ;;  %v1176_v43 = vsel %vm778_vm3, %v1159_v18, %v4116_v15 }
  0xd8   : > { %v4122_v30 = vsel %vm1034_vm12, %v2920_v61, %v5754_v19  ;;  %v4131_v49 = vsel %vm560_vm13, %v5755_v57, %v2930_v0  ;;  %v5759_v46 = vunpack.i.l.bf16 %v4075_v13  ;;  %v4156_v60 = vsel %vm560_vm13, %v2934_v51, %v2935_v54 }
  0xd9   : > { %v4136_v11 = vsel %vm560_vm13, %v2935_v54, %v5756_v12  ;;  %v1177_v12 = vsel %vm778_vm3, %v1160_v36, %v4122_v30  ;;  %v4151_v53 = vsel %vm627_vm14, %v2945_v48, %v2949_v23  ;;  %v1191_v18 = vsel %vm795_vm5, %v1174_v38, %v4131_v49 }
  0xda   : > { %5757 = vst [vmem:[#allocation38_spill] sm:$0xff] %v4136_v11  ;;  %v2963_v19 = vpop.permute.xlu1 %2962  ;;  %v4139_v7 = vpop.permute.xlu0 %2957  ;;  %v4146_v10 = vsel %vm627_vm14, %v5759_v46, %v2945_v48  ;;  %5760 = vst [vmem:[#allocation40_spill] sm:$0xff] %v4151_v53  ;;  %v1192_v46 = vsel %vm795_vm5, %v1175_v47, %v4126_v8  ;;  %v5761_v36 = vunpack.i.l.bf16 %v4106_v17 }
  0xdb   : > { %5758 = vst [vmem:[#allocation39_spill] sm:$0xff] %v4139_v7  ;;  %v2965_v0 = vunpack.i.h.bf16 %v2963_v19  ;;  %v2964_v57 = vunpack.i.l.bf16 %v2963_v19  ;;  %v2960_v6 = vunpack.i.h.bf16 %v4139_v7  ;;  %v5659_v61 = vunpack.i.l.bf16 %v4139_v7 }
  0xdc   : > { %v1194_v19 = vsel %vm795_vm5, %v1177_v12, %v4136_v11  ;;  %v4167_v48 = vsel %vm627_vm14, %v2950_v56, %v5761_v36  ;;  %v1208_v47 = vsel %vm812_vm6, %v1191_v18, %v4146_v10  ;;  %v4180_v12 = vsel %vm627_vm14, %v2949_v23, %v2950_v56 }
  0xdd   : > { %5762 = vst [vmem:[#allocation41_spill] sm:$0xff] %v4167_v48  ;;  %v1107_v14 = vsel %vm1104_vm15, %v2960_v6, %v2964_v57  ;;  %v1106_v51 = vsel %vm1104_vm15, %v5659_v61, %v2960_v6  ;;  %v1108_v52 = vsel %vm1104_vm15, %v2964_v57, %v2965_v0  ;;  %v1209_v35 = vsel %vm812_vm6, %v1192_v46, %v4151_v53 }
  0xde   : > { %v4173_v54 = vpop.permute.xlu1 %2972  ;;  %v4175_v38 = vpop.permute.xlu0 %2967  ;;  %v1225_v61 = vsel %vm829_vm7, %v1208_v47, %v1106_v51  ;;  %v1226_v7 = vsel %vm829_vm7, %v1209_v35, %v1107_v14  ;;  %v1193_v18 = vsel %vm795_vm5, %v1176_v43, %v4156_v60  ;;  %v1211_v57 = vsel %vm812_vm6, %v1194_v19, %v4167_v48 }
  0xdf   : > { %v5663_v36 = vunpack.i.l.bf16 %v4175_v38  ;;  %v2975_v4 = vunpack.i.h.bf16 %v4173_v54  ;;  %v3181_v56 = vpack.i.bf16 %v1226_v7, %v1225_v61  ;;  %v5763_v46 = vunpack.i.h.bf16 %v3809_v62 }
  0xe0   : > { %v5764_v11 = vunpack.i.l.bf16 %v3809_v62  ;;  %v1210_v14 = vsel %vm812_vm6, %v1193_v18, %v4180_v12  ;;  %v1590_v61 = vsel %vm795_vm5, %v4028_v50, 0.0  ;;  %v5665_v7 = vunpack.i.l.bf16 %v3855_v45 }
  0xe1   : > { %v1109_v23 = vsel %vm1104_vm15, %v2965_v0, %v5663_v36  ;;  %v1348_v0 = vsel %vm778_vm3, %v4000_v26, %v1037_v27  ;;  %3182 = vrot.lane.b32.xlu1 %v3181_v56, %s3348_s29  ;;  %v1227_v19 = vsel %vm829_vm7, %v1210_v14, %v1108_v52  ;;  %v1347_v47 = vsel %vm778_vm3, %v4011_v21, %v4093_v2 }
  0xe2   : > { %v437_v6 = vsel %vm426_vm9, %v5764_v11, %v5763_v46  ;;  %v4202_v51 = vpop.permute.xlu1 %2982  ;;  %v4204_v35 = vpop.permute.xlu0 %2977  ;;  %v1228_v43 = vsel %vm829_vm7, %v1211_v57, %v1109_v23  ;;  %v1365_v18 = vsel %vm795_vm5, %v1348_v0, %v4126_v8  ;;  %v5765_v50 = vunpack.i.l.bf16 %v4173_v54 }
  0xe3   : > { %v5664_v11 = vunpack.i.l.bf16 %v4204_v35  ;;  %v3186_v27 = vpack.i.bf16 %v1228_v43, %v1227_v19  ;;  %v1364_v56 = vsel %vm795_vm5, %v1347_v47, %v4131_v49  ;;  %v1382_v2 = vsel %vm812_vm6, %v1365_v18, %v4151_v53 }
  0xe4   : > { %v4225_v23 = vsel %vm694_vm4, %v5765_v50, %v2975_v4  ;;  %v1591_v57 = vsel %vm795_vm5, %v4031_v40, 0.0  ;;  %v5767_v46 = vunpack.i.l.bf16 %v3809_v62  ;;  %v5768_v14 = vunpack.i.h.bf16 %v3811_v63 }
  0xe5   : > { %v4232_v52 = vsel %vm694_vm4, %v2975_v4, %v5664_v11  ;;  %v2895_v0 = vunpack.i.h.bf16 %v3891_v24  ;;  %3187 = vrot.lane.b32.xlu0 %v3186_v27, %s3348_s29  ;;  %v1381_v47 = vsel %vm812_vm6, %v1364_v56, %v4146_v10  ;;  %v4255_v18 = vsel %vm761_vm2, %v3969_v5, %v437_v6 }
  0xe6   : > { %5766 = vst [vmem:[#allocation42_spill] sm:$0xff] %v4232_v52  ;;  %v436_v43 = vsel %vm426_vm9, %v5768_v14, %v5767_v46  ;;  %v4245_v19 = vpop.permute.xlu1 %2992  ;;  %v4247_v4 = vpop.permute.xlu0 %2987  ;;  %v1399_v40 = vsel %vm829_vm7, %v1382_v2, %v4232_v52  ;;  %5769 = vst [vmem:[#allocation43_spill] sm:$0xff] %v4255_v18  ;;  %v5770_v50 = vunpack.i.l.bf16 %v3811_v63  ;;  %v5771_v46 = vunpack.i.h.bf16 %v3782_v42 }
  0xe7   : > { %v1398_v56 = vsel %vm829_vm7, %v1381_v47, %v4225_v23  ;;  %v5773_v5 = vunpack.i.h.bf16 %v3809_v62  ;;  %v2910_v2 = vunpack.i.h.bf16 %v3962_v22  ;;  %v2925_v42 = vunpack.i.h.bf16 %v3995_v31 }
  0xe8   : > { %v434_v27 = vsel %vm426_vm9, %v5771_v46, %v5770_v50  ;;  %v5772_v36 = vmov %v5770_v50  ;;  %v3196_v50 = vpack.i.bf16 %v1399_v40, %v1398_v56  ;;  %v2940_v46 = vunpack.i.h.bf16 %v4077_v16 }
  0xe9   : > { %v435_v11 = vsel %vm426_vm9, %v5772_v36, %v5768_v14  ;;  %v438_v6 = vsel %vm426_vm9, %v5773_v5, %v5665_v7  ;;  %v2955_v63 = vunpack.i.h.bf16 %v4106_v17  ;;  %v1527_v36 = vsel %vm727_vm0, %v3440_v33, 0.0 }
  0xea   : > { %v1528_v47 = vsel %vm727_vm0, %v3429_v29, 0.0  ;;  %v4284_v62 = vsel %vm761_vm2, %v3954_v58, %v434_v27  ;;  %v4288_v14 = vsel %vm761_vm2, %v3914_v9, %v435_v11  ;;  %v4292_v40 = vsel %vm761_vm2, %v3958_v25, %v436_v43  ;;  %3197 = vrot.lane.b32.xlu0 %v3196_v50, %s3349_s30  ;;  %v4298_v29 = vpop.permute.xlu1 %3002  ;;  %v4300_v33 = vpop.permute.xlu0 %2997 }
  0xeb   : > { %v5774_v56 = vunpack.i.l.bf16 %v3853_v20  ;;  %v4305_v9 = vsel %vm761_vm2, %v3973_v1, %v438_v6  ;;  %v4308_v25 = vsel %vm812_vm6, %v1590_v61, 0.0  ;;  %v4311_v20 = vsel %vm812_vm6, %v1591_v57, 0.0 }
  0xec   : > { %5775 = vst [vmem:[#allocation44_spill] sm:$0xff] %v4305_v9  ;;  %v5776_v11 = vunpack.i.l.bf16 %v3933_v59  ;;  %v1544_v50 = vsel %vm744_vm1, %v1527_v36, 0.0  ;;  %v5778_v61 = vunpack.i.l.bf16 %v4049_v28  ;;  %v5780_v59 = vunpack.i.l.bf16 %v4075_v13 }
  0xed   : > { %v899_v5 = vsel %vm898_vm10, %v2895_v0, %v5774_v56  ;;  %v5777_v0 = vunpack.i.l.bf16 %v3960_v55  ;;  %v1545_v56 = vsel %vm744_vm1, %v1528_v47, 0.0  ;;  %v4335_v55 = vsel %vm727_vm0, %v3438_v32, 0.0 }
  0xee   : > { %v967_v43 = vsel %vm966_vm11, %v2910_v2, %v5776_v11  ;;  %v1139_v1 = vsel %vm744_vm1, %v3666_v3, %v899_v5  ;;  %v4326_v57 = vsel %vm560_vm13, %v2940_v46, %v5778_v61  ;;  %v4331_v6 = vsel %vm627_vm14, %v2955_v63, %v5780_v59  ;;  %v4345_v46 = vpop.permute.xlu1 %3012  ;;  %v4347_v63 = vpop.permute.xlu0 %3007 }
  0xef   : > { %v1035_v27 = vsel %vm1034_vm12, %v2925_v42, %v5777_v0  ;;  %5779 = vst [vmem:[#allocation45_spill] sm:$0xff] %v4326_v57  ;;  %5781 = vst [vmem:[#allocation46_spill] sm:$0xff] %v4331_v6  ;;  %v2970_v2 = vunpack.i.h.bf16 %v4175_v38  ;;  %v2985_v42 = vunpack.i.h.bf16 %v4202_v51  ;;  %v5666_v3 = vunpack.i.l.bf16 %v4202_v51 }
  0xf0   : > { %v2980_v28 = vunpack.i.h.bf16 %v4204_v35  ;;  %v5782_v13 = vpack.i.bf16 %v3628_v44, %v3625_v41  ;;  %v1156_v32 = vsel %vm761_vm2, %v1139_v1, %v967_v43  ;;  %v1346_v36 = vsel %vm778_vm3, %v4007_v34, %v1035_v27  ;;  %v5798_v34 = vld [vmem:[#allocation27_spill] sm:$0xff] }
  0xf1   : > { %v4353_v47 = vsel %vm761_vm2, %v1544_v50, 0.0  ;;  %v4356_v5 = vsel %vm761_vm2, %v1545_v56, 0.0  ;;  %v1173_v11 = vsel %vm778_vm3, %v1156_v32, %v1035_v27  ;;  %v1349_v41 = vsel %vm778_vm3, %v4035_v37, %v4116_v15  ;;  %v5783_v56 = vld [vmem:[#allocation38_spill] sm:$0xff]  ;;  %v5784_v15 = vld [vmem:[#allocation39_spill] sm:$0xff] }
  0xf2   : > { %3207 = vrot.lane.b32.xlu0 %v5782_v13, %s3350_s4  ;;  %v1350_v44 = vsel %vm778_vm3, %v4039_v39, %v4122_v30  ;;  %v1363_v43 = vsel %vm795_vm5, %v1346_v36, %v4326_v57  ;;  %v1366_v0 = vsel %vm795_vm5, %v1349_v41, %v4156_v60  ;;  %v1190_v50 = vsel %vm795_vm5, %v1173_v11, %v4326_v57  ;;  %v4388_v36 = vpop.permute.xlu1 %3022  ;;  %v4390_v11 = vpop.permute.xlu0 %3017 }
  0xf3   : > { %v1367_v27 = vsel %vm795_vm5, %v1350_v44, %v5783_v56  ;;  %v1380_v1 = vsel %vm812_vm6, %v1363_v43, %v4331_v6  ;;  %v5785_v61 = vunpack.i.l.bf16 %v5784_v15  ;;  %v5786_v30 = vunpack.i.l.bf16 %v4173_v54 }
  0xf4   : > { %v4386_v32 = vsel %vm694_vm4, %v2980_v28, %v5666_v3  ;;  %v1207_v41 = vsel %vm812_vm6, %v1190_v50, %v4331_v6  ;;  %v5789_v44 = vunpack.i.l.bf16 %v4204_v35  ;;  %v5669_v54 = vunpack.i.h.bf16 %v4245_v19 }
  0xf5   : > { %v1105_v59 = vsel %vm1104_vm15, %v2970_v2, %v5785_v61  ;;  %v4381_v13 = vsel %vm694_vm4, %v2985_v42, %v5786_v30  ;;  %5788 = vst [vmem:[#allocation47_spill] sm:$0xff] %v4386_v32  ;;  %v2994_v42 = vunpack.i.l.bf16 %v4245_v19  ;;  %v2990_v43 = vunpack.i.h.bf16 %v4247_v4 }
  0xf6   : > { %5787 = vst [vmem:[#allocation39_spill] sm:$0xff] %v4381_v13  ;;  %v4397_v2 = vsel %vm694_vm4, %v5789_v44, %v2980_v28  ;;  %v2989_v15 = vunpack.i.l.bf16 %v4247_v4  ;;  %v3004_v30 = vunpack.i.l.bf16 %v4298_v29  ;;  %v3000_v7 = vunpack.i.h.bf16 %v4300_v33  ;;  %v4416_v3 = vpop.permute.xlu1 %3032  ;;  %v4418_v61 = vpop.permute.xlu0 %3027 }
  0xf7   : > { %5790 = vst [vmem:[#allocation48_spill] sm:$0xff] %v4397_v2  ;;  %v2999_v50 = vunpack.i.l.bf16 %v4300_v33  ;;  %v4408_v35 = vsel %vm829_vm7, %v1207_v41, %v1105_v59  ;;  %v1383_v28 = vsel %vm812_vm6, %v1366_v0, %v4180_v12  ;;  %v1384_v44 = vsel %vm812_vm6, %v1367_v27, %v4167_v48 }
  0xf8   : > { %v3014_v4 = vunpack.i.l.bf16 %v4345_v46  ;;  %v4422_v33 = vsel %vm829_vm7, %v1383_v28, %v4397_v2  ;;  %v4426_v59 = vsel %vm829_vm7, %v1384_v44, %v4386_v32  ;;  %v907_v0 = vsel %vm898_vm10, %v2994_v42, %v5669_v54 }
  0xf9   : > { %v906_v27 = vsel %vm898_vm10, %v2990_v43, %v2994_v42  ;;  %v3009_v41 = vunpack.i.l.bf16 %v4347_v63  ;;  %v4435_v58 = vsel %vm829_vm7, %v1380_v1, %v4381_v13  ;;  %v5791_v48 = vunpack.i.l.bf16 %v3891_v24  ;;  %v5794_v13 = vld [vmem:[#allocation28_spill] sm:$0xff] }
  0xfa   : > { %v905_v56 = vsel %vm898_vm10, %v2989_v15, %v2990_v43  ;;  %v5792_v44 = vunpack.i.h.bf16 %v4298_v29  ;;  %v974_v54 = vsel %vm966_vm11, %v3000_v7, %v3004_v30  ;;  %v5793_v42 = vunpack.i.l.bf16 %v3962_v22  ;;  %v3038_v22 = vpop.permute.xlu0 %3037 }
  0xfb   : > { %v904_v28 = vsel %vm898_vm10, %v5791_v48, %v2989_v15  ;;  %v973_v6 = vsel %vm966_vm11, %v2999_v50, %v3000_v7  ;;  %v3010_v1 = vunpack.i.h.bf16 %v4347_v63  ;;  %v3019_v24 = vunpack.i.l.bf16 %v4390_v11  ;;  %v5796_v7 = vld [vmem:[#allocation21_spill] sm:$0xff] }
  0xfc   : > { %v975_v32 = vsel %vm966_vm11, %v3004_v30, %v5792_v44  ;;  %v972_v39 = vsel %vm966_vm11, %v5793_v42, %v2999_v50  ;;  %v1147_v48 = vsel %vm744_vm1, %v5794_v13, %v907_v0  ;;  %v5795_v43 = vunpack.i.h.bf16 %v4345_v46  ;;  %v4457_v30 = vpop.permute.xlu1 %3042  ;;  %v5797_v50 = vld [vmem:[#allocation22_spill] sm:$0xff] }
  0xfd   : > { %v3029_v44 = vunpack.i.l.bf16 %v4418_v61  ;;  %v1144_v63 = vsel %vm744_vm1, %v5796_v7, %v904_v28  ;;  %v1145_v57 = vsel %vm744_vm1, %v5797_v50, %v905_v56  ;;  %v1146_v13 = vsel %vm744_vm1, %v5798_v34, %v906_v27 }
  0xfe   : > { %v1043_v15 = vsel %vm1034_vm12, %v3014_v4, %v5795_v43  ;;  %v5799_v0 = vunpack.i.l.bf16 %v3995_v31  ;;  %v1164_v52 = vsel %vm761_vm2, %v1147_v48, %v975_v32  ;;  %v1161_v2 = vsel %vm761_vm2, %v1144_v63, %v972_v39  ;;  %v5801_v32 = vld [vmem:[#allocation37_spill] sm:$0xff] }
  0xff   : > { %v1162_v53 = vsel %vm761_vm2, %v1145_v57, %v973_v6  ;;  %v1163_v42 = vsel %vm761_vm2, %v1146_v13, %v974_v54  ;;  %v1181_v28 = vsel %vm778_vm3, %v1164_v52, %v1043_v15  ;;  %v1042_v7 = vsel %vm1034_vm12, %v3010_v1, %v3014_v4  ;;  %v3048_v4 = vpop.permute.xlu0 %3047 }
 0x100   : > { %v1040_v43 = vsel %vm1034_vm12, %v5799_v0, %v3009_v41  ;;  %v1041_v56 = vsel %vm1034_vm12, %v3009_v41, %v3010_v1  ;;  %v5800_v34 = vunpack.i.l.bf16 %v4077_v16  ;;  %v5802_v57 = vunpack.i.l.bf16 %v4106_v17  ;;  %v4490_v54 = vpop.permute.xlu1 %3052 }
 0x101   : > { %v1178_v27 = vsel %vm778_vm3, %v1161_v2, %v1040_v43  ;;  %v1351_v39 = vsel %vm778_vm3, %v5801_v32, %v1040_v43  ;;  %v3039_v52 = vunpack.i.l.bf16 %v3038_v22  ;;  %v3024_v16 = vunpack.i.l.bf16 %v4388_v36 }
 0x102   : > { %v4480_v31 = vsel %vm560_vm13, %v5800_v34, %v3019_v24  ;;  %v4488_v6 = vsel %vm627_vm14, %v5802_v57, %v3029_v44  ;;  %v3020_v1 = vunpack.i.h.bf16 %v4390_v11  ;;  %v3049_v48 = vunpack.i.l.bf16 %v3048_v4 }
 0x103   : > { %v1195_v2 = vsel %vm795_vm5, %v1178_v27, %v4480_v31  ;;  %v1368_v17 = vsel %vm795_vm5, %v1351_v39, %v4480_v31  ;;  %v3034_v63 = vunpack.i.l.bf16 %v4416_v3  ;;  %v5803_v50 = vunpack.i.l.bf16 %v4175_v38 }
 0x104   : > { %v3030_v0 = vunpack.i.h.bf16 %v4418_v61  ;;  %v1385_v43 = vsel %vm812_vm6, %v1368_v17, %v4488_v6  ;;  %v5804_v11 = vunpack.i.l.bf16 %v4202_v51  ;;  %v1212_v27 = vsel %vm812_vm6, %v1195_v2, %v4488_v6  ;;  %v4515_v41 = vpop.permute.xlu1 %3062 }
 0x105   : > { %v1110_v13 = vsel %vm1104_vm15, %v5803_v50, %v3039_v52  ;;  %v3040_v57 = vunpack.i.h.bf16 %v3038_v22  ;;  %v4517_v50 = vpop.permute.xlu0 %3057  ;;  %v1354_v51 = vsel %vm778_vm3, %v4288_v14, %v1043_v15  ;;  %v1179_v17 = vsel %vm778_vm3, %v1162_v53, %v1041_v56 }
 0x106   : > { %v4509_v34 = vsel %vm694_vm4, %v5804_v11, %v3049_v48  ;;  %v1229_v38 = vsel %vm829_vm7, %v1212_v27, %v1110_v13  ;;  %v1180_v11 = vsel %vm778_vm3, %v1163_v42, %v1042_v7  ;;  %v5805_v22 = vunpack.i.h.bf16 %v4388_v36 }
 0x107   : > { %v1402_v61 = vsel %vm829_vm7, %v1385_v43, %v4509_v34  ;;  %v3191_v2 = vpack.i.bf16 %v1229_v38, %v4408_v35  ;;  %v4532_v27 = vsel %vm560_vm13, %v3020_v1, %v3024_v16  ;;  %v4535_v39 = vsel %vm560_vm13, %v3019_v24, %v3020_v1  ;;  %v5809_v38 = vld [vmem:[#allocation35_spill] sm:$0xff] }
 0x108   : > { %v4529_v13 = vsel %vm560_vm13, %v3024_v16, %v5805_v22  ;;  %5806 = vst [vmem:[#allocation28_spill] sm:$0xff] %v4532_v27  ;;  %v3216_v43 = vpack.i.bf16 %v1402_v61, %v4435_v58  ;;  %v4539_v15 = vsel %vm627_vm14, %v3030_v0, %v3034_v63  ;;  %v4542_v53 = vsel %vm627_vm14, %v3029_v44, %v3030_v0  ;;  %v4554_v44 = vpop.permute.xlu1 %3072 }
 0x109   : > { %5807 = vst [vmem:[#allocation21_spill] sm:$0xff] %v4539_v15  ;;  %5808 = vst [vmem:[#allocation22_spill] sm:$0xff] %v4542_v53  ;;  %v3054_v35 = vunpack.i.l.bf16 %v4490_v54  ;;  %v3050_v42 = vunpack.i.h.bf16 %v3048_v4  ;;  %3192 = vrot.lane.b32.xlu1 %v3191_v2, %s3348_s29  ;;  %v1352_v16 = vsel %vm778_vm3, %v5809_v38, %v1041_v56  ;;  %v5678_v22 = vunpack.i.h.bf16 %v4416_v3  ;;  %v3068_v0 = vpop.permute.xlu0 %3067 }
 0x10a   : > { %v5810_v24 = vunpack.i.l.bf16 %v4457_v30  ;;  %v1111_v1 = vsel %vm1104_vm15, %v3039_v52, %v3040_v57  ;;  %3217 = vrot.lane.b32.xlu0 %v3216_v43, %s3349_s30  ;;  %v1353_v4 = vsel %vm778_vm3, %v4284_v62, %v1042_v7  ;;  %v1198_v61 = vsel %vm795_vm5, %v1181_v28, %v4529_v13 }
 0x10b   : > { %v1196_v56 = vsel %vm795_vm5, %v1179_v17, %v4535_v39  ;;  %v1197_v2 = vsel %vm795_vm5, %v1180_v11, %v4532_v27  ;;  %v1369_v52 = vsel %vm795_vm5, %v1352_v16, %v4535_v39  ;;  %v4573_v28 = vsel %vm694_vm4, %v3050_v42, %v3054_v35 }
 0x10c   : > { %v1112_v58 = vsel %vm1104_vm15, %v3040_v57, %v5810_v24  ;;  %v1370_v57 = vsel %vm795_vm5, %v1353_v4, %v4532_v27  ;;  %v1213_v43 = vsel %vm812_vm6, %v1196_v56, %v4542_v53  ;;  %v1214_v7 = vsel %vm812_vm6, %v1197_v2, %v4539_v15  ;;  %5811 = vst [vmem:[#allocation27_spill] sm:$0xff] %v4573_v28 }
 0x10d   : > { %v4576_v17 = vsel %vm694_vm4, %v3049_v48, %v3050_v42  ;;  %v5813_v11 = vpack.i.bf16 %v4426_v59, %v4422_v33  ;;  %v1230_v16 = vsel %vm829_vm7, %v1213_v43, %v1111_v1  ;;  %v1231_v24 = vsel %vm829_vm7, %v1214_v7, %v1112_v58  ;;  %v5815_v33 = vld [vmem:[#allocation3_spill] sm:$0xff]  ;;  %v4597_v59 = vpop.permute.xlu1 %3082  ;;  %v3078_v58 = vpop.permute.xlu0 %3077 }
 0x10e   : > { %5812 = vst [vmem:[#allocation37_spill] sm:$0xff] %v4576_v17  ;;  %v1371_v4 = vsel %vm795_vm5, %v1354_v51, %v4529_v13  ;;  %v4589_v56 = vsel %vm627_vm14, %v3034_v63, %v5678_v22  ;;  %v1386_v48 = vsel %vm812_vm6, %v1369_v52, %v4542_v53  ;;  %v1387_v42 = vsel %vm812_vm6, %v1370_v57, %v4539_v15  ;;  %v5816_v1 = vld [vmem:[#allocation11_spill] sm:$0xff]  ;;  %v5817_v51 = vld [vmem:[#allocation10_spill] sm:$0xff] }
 0x10f   : > { %3202 = vrot.lane.b32.xlu1 %v5813_v11, %s3349_s30  ;;  %5814 = vst [vmem:[#allocation35_spill] sm:$0xff] %v4589_v56  ;;  %3227 = vrot.lane.b32.xlu0 %v5815_v33, %s3347_s28  ;;  %v3060_v63 = vunpack.i.h.bf16 %v4517_v50  ;;  %v3059_v43 = vunpack.i.l.bf16 %v4517_v50  ;;  %v3236_v52 = vpack.i.bf16 %v1231_v24, %v1230_v16  ;;  %v1403_v57 = vsel %vm829_vm7, %v1386_v48, %v4576_v17 }
 0x110   : > { %v1404_v7 = vsel %vm829_vm7, %v1387_v42, %v4573_v28  ;;  %v3070_v33 = vunpack.i.h.bf16 %v3068_v0  ;;  %v3069_v22 = vunpack.i.l.bf16 %v3068_v0  ;;  %v5818_v15 = vpack.i.bf16 %v5816_v1, %v5817_v51 }
 0x111   : > { %v1215_v2 = vsel %vm812_vm6, %v1198_v61, %v4589_v56  ;;  %v3080_v16 = vunpack.i.h.bf16 %v3078_v58  ;;  %v3079_v24 = vunpack.i.l.bf16 %v3078_v58  ;;  %v4617_v48 = vpop.permute.xlu1 %3092  ;;  %v3088_v42 = vpop.permute.xlu0 %3087  ;;  %v4621_v0 = vsel %vm812_vm6, %v1371_v4, %v4589_v56 }
 0x112   : > { %v5819_v11 = vunpack.i.h.bf16 %v4457_v30  ;;  %v5821_v61 = vunpack.i.h.bf16 %v4490_v54  ;;  %v5823_v50 = vunpack.i.l.bf16 %v4515_v41  ;;  %v5824_v28 = vunpack.i.h.bf16 %v4245_v19  ;;  %v5828_v19 = vld [vmem:[#allocation23_spill] sm:$0xff] }
 0x113   : > { %3212 = vrot.lane.b32.xlu1 %v5818_v15, %s3350_s4  ;;  %3237 = vrot.lane.b32.xlu0 %v3236_v52, %s3348_s29  ;;  %v5820_v15 = vunpack.i.l.bf16 %v4457_v30  ;;  %v5685_v52 = vmov 0.0   ;;  %v5826_v58 = vunpack.i.h.bf16 %v4298_v29  ;;  %v977_v53 = vsel %vm966_vm11, %v3069_v22, %v3070_v33 }
 0x114   : > { %v4631_v51 = vsel %vm694_vm4, %v3054_v35, %v5821_v61  ;;  %1892 = vmatprep.mubr.f32.mxu0 %v5685_v52  ;;  %v910_v4 = vsel %vm898_vm10, %v3060_v63, %v5823_v50  ;;  %v908_v17 = vsel %vm898_vm10, %v5824_v28, %v3059_v43  ;;  %1975 = vmatprep.mubr.f32.mxu1 %v5685_v52  ;;  %v5825_v35 = vunpack.i.l.bf16 %v4554_v44  ;;  %v5827_v50 = vld [vmem:[#allocation24_spill] sm:$0xff]  ;;  %v5834_v52 = vld [vmem:[#allocation29_spill] sm:$0xff] }
 0x115   : > { %v1113_v1 = vsel %vm1104_vm15, %v5820_v15, %v5819_v11  ;;  %5822 = vst [vmem:[#allocation3_spill] sm:$0xff] %v4631_v51  ;;  %v909_v11 = vsel %vm898_vm10, %v3059_v43, %v3060_v63  ;;  %v3246_v15 = vpack.i.bf16 %v1404_v7, %v1403_v57  ;;  %v976_v56 = vsel %vm966_vm11, %v5826_v58, %v3069_v22  ;;  %v4662_v22 = vpop.permute.xlu1 %3102  ;;  %v5832_v58 = vld [vmem:[#allocation26_spill] sm:$0xff] }
 0x116   : > { %v978_v61 = vsel %vm966_vm11, %v3070_v33, %v5825_v35  ;;  %v5829_v27 = vpack.i.bf16 %v5827_v50, %v5828_v19  ;;  %v3089_v28 = vunpack.i.l.bf16 %v3088_v42  ;;  %v5830_v63 = vunpack.i.l.bf16 %v4597_v59  ;;  %v3098_v33 = vpop.permute.xlu0 %3097  ;;  %v5833_v50 = vld [vmem:[#allocation25_spill] sm:$0xff] }
 0x117   : > { %v5831_v57 = vunpack.i.h.bf16 %v4345_v46  ;;  %v1045_v29 = vsel %vm1034_vm12, %v3079_v24, %v3080_v16  ;;  %v3090_v35 = vunpack.i.h.bf16 %v3088_v42  ;;  %3247 = vrot.lane.b32.xlu0 %v3246_v15, %s3349_s30  ;;  %v1149_v19 = vsel %vm744_vm1, %v5833_v50, %v909_v11 }
 0x118   : > { %3222 = vrot.lane.b32.xlu1 %v5829_v27, %s3350_s4  ;;  %v1046_v43 = vsel %vm1034_vm12, %v3080_v16, %v5830_v63  ;;  %v1148_v27 = vsel %vm744_vm1, %v5832_v58, %v908_v17  ;;  %v1150_v63 = vsel %vm744_vm1, %v5834_v52, %v910_v4  ;;  %v5688_v46 = vunpack.i.l.bf16 %v4617_v48  ;;  %v5836_v4 = vld [vmem:[#allocation6_spill] sm:$0xff] }
 0x119   : > { %v1044_v7 = vsel %vm1034_vm12, %v5831_v57, %v3079_v24  ;;  %v1165_v57 = vsel %vm761_vm2, %v1148_v27, %v976_v56  ;;  %v1166_v16 = vsel %vm761_vm2, %v1149_v19, %v977_v53  ;;  %v1167_v24 = vsel %vm761_vm2, %v1150_v63, %v978_v61  ;;  %v5838_v61 = vld [vmem:[#allocation31_spill] sm:$0xff]  ;;  %v5839_v27 = vld [vmem:[#allocation30_spill] sm:$0xff]  ;;  %v4693_v19 = vpop.permute.xlu1 %3112 }
 0x11a   : > { %v1232_v42 = vsel %vm829_vm7, %v1215_v2, %v1113_v1  ;;  %v1182_v15 = vsel %vm778_vm3, %v1165_v57, %v1044_v7  ;;  %v1183_v17 = vsel %vm778_vm3, %v1166_v16, %v1045_v29  ;;  %v1184_v58 = vsel %vm778_vm3, %v1167_v24, %v1046_v43 }
 0x11b   : > { %v5835_v11 = vunpack.i.h.bf16 %v4388_v36  ;;  %v4686_v53 = vsel %vm560_vm13, %v3089_v28, %v3090_v35  ;;  %v5687_v56 = vunpack.i.l.bf16 %v4662_v22  ;;  %v3100_v2 = vunpack.i.h.bf16 %v3098_v33  ;;  %v3108_v36 = vpop.permute.xlu0 %3107 }
 0x11c   : > { %3232 = vrot.lane.b32.xlu1 %v5836_v4, %s3347_s28  ;;  %5837 = vst [vmem:[#allocation11_spill] sm:$0xff] %v4686_v53  ;;  %v3099_v1 = vunpack.i.l.bf16 %v3098_v33  ;;  %v5840_v50 = vpack.i.bf16 %v5838_v61, %v5839_v27  ;;  %v4698_v63 = vsel %vm560_vm13, %v3090_v35, %v5688_v46  ;;  %v3110_v57 = vunpack.i.h.bf16 %v3108_v36 }
 0x11d   : > { %v4681_v52 = vsel %vm560_vm13, %v5835_v11, %v3089_v28  ;;  %5841 = vst [vmem:[#allocation10_spill] sm:$0xff] %v4698_v63  ;;  %v5690_v28 = vunpack.i.l.bf16 %v4693_v19  ;;  %v3109_v16 = vunpack.i.l.bf16 %v3108_v36  ;;  %v1355_v33 = vsel %vm778_vm3, %v4292_v40, %v1044_v7 }
 0x11e   : > { %3257 = vrot.lane.b32.xlu0 %v5840_v50, %s3350_s4  ;;  %v1356_v24 = vsel %vm778_vm3, %v4255_v18, %v1045_v29  ;;  %v5842_v11 = vunpack.i.h.bf16 %v4416_v3  ;;  %v4711_v61 = vsel %vm627_vm14, %v3099_v1, %v3100_v2  ;;  %v1357_v35 = vsel %vm778_vm3, %v4305_v9, %v1046_v43  ;;  %v5846_v50 = vld [vmem:[#allocation4_spill] sm:$0xff]  ;;  %v5875_v9 = vld [vmem:[#allocation17_spill] sm:$0xff] }
 0x11f   : > { %5844 = vst [vmem:[#allocation23_spill] sm:$0xff] %v4711_v61  ;;  %v1199_v27 = vsel %vm795_vm5, %v1182_v15, %v4681_v52  ;;  %v1200_v7 = vsel %vm795_vm5, %v1183_v17, %v4686_v53  ;;  %v4722_v29 = vsel %vm627_vm14, %v3100_v2, %v5687_v56  ;;  %v1201_v3 = vsel %vm795_vm5, %v1184_v58, %v4698_v63  ;;  %v4734_v17 = vpop.permute.xlu1 %3122  ;;  %v3118_v36 = vpop.permute.xlu0 %3117  ;;  %v5876_v18 = vld [vmem:[#allocation16_spill] sm:$0xff] }
 0x120   : > { %v4708_v4 = vsel %vm627_vm14, %v5842_v11, %v3099_v1  ;;  %5845 = vst [vmem:[#allocation26_spill] sm:$0xff] %v4722_v29  ;;  %v1372_v1 = vsel %vm795_vm5, %v1355_v33, %v4681_v52  ;;  %v1373_v43 = vsel %vm795_vm5, %v1356_v24, %v4686_v53  ;;  %v1217_v2 = vsel %vm812_vm6, %v1200_v7, %v4711_v61 }
 0x121   : > { %5843 = vst [vmem:[#allocation24_spill] sm:$0xff] %v4708_v4  ;;  %v1216_v15 = vsel %vm812_vm6, %v1199_v27, %v4708_v4  ;;  %v1116_v58 = vsel %vm1104_vm15, %v3110_v57, %v5690_v28  ;;  %v5847_v33 = vunpack.i.h.bf16 %v4457_v30  ;;  %v1115_v11 = vsel %vm1104_vm15, %v3109_v16, %v3110_v57 }
 0x122   : > { %3267 = vrot.lane.b32.xlu0 %v5846_v50, %s3347_s28  ;;  %v1218_v27 = vsel %vm812_vm6, %v1201_v3, %v4722_v29  ;;  %v5691_v50 = vunpack.i.l.bf16 %v4734_v17  ;;  %v3120_v56 = vunpack.i.h.bf16 %v3118_v36  ;;  %v3119_v46 = vunpack.i.l.bf16 %v3118_v36 }
 0x123   : > { %v1114_v24 = vsel %vm1104_vm15, %v5847_v33, %v3109_v16  ;;  %v1374_v7 = vsel %vm795_vm5, %v1357_v35, %v4698_v63  ;;  %v1234_v53 = vsel %vm829_vm7, %v1217_v2, %v1115_v11  ;;  %v1235_v28 = vsel %vm829_vm7, %v1218_v27, %v1116_v58  ;;  %v4768_v36 = vpop.permute.xlu1 %896  ;;  %v4770_v2 = vpop.permute.xlu0 %3127  ;;  %v4907_v63 = vld [vmem:[%s3387_s17 + $0x10] ss:$0 sm:$0xff] }
 0x124   : > { %v1233_v30 = vsel %vm829_vm7, %v1216_v15, %v1114_v24  ;;  %v1389_v33 = vsel %vm812_vm6, %v1372_v1, %v4708_v4  ;;  %v4758_v57 = vsel %vm694_vm4, %v3120_v56, %v5691_v50  ;;  %v5849_v16 = vunpack.i.h.bf16 %v4490_v54  ;;  %v5887_v4 = vld [vmem:[#allocation19_spill] sm:$0xff] }
 0x125   : > { %5848 = vst [vmem:[#allocation25_spill] sm:$0xff] %v4758_v57  ;;  %v4766_v35 = vsel %vm694_vm4, %v3119_v46, %v3120_v56  ;;  %v1390_v1 = vsel %vm812_vm6, %v1373_v43, %v4711_v61  ;;  %v1391_v15 = vsel %vm812_vm6, %v1374_v7, %v4722_v29  ;;  %v3276_v58 = vpack.i.bf16 %v1235_v28, %v1234_v53  ;;  %v5852_v28 = vld [vmem:[#allocation33_spill] sm:$0xff] }
 0x126   : > { %v4763_v3 = vsel %vm694_vm4, %v5849_v16, %v3119_v46  ;;  %5851 = vst [vmem:[#allocation6_spill] sm:$0xff] %v4766_v35  ;;  %v3241_v24 = vpack.i.bf16 %v1233_v30, %v1232_v42  ;;  %v1407_v54 = vsel %vm829_vm7, %v1390_v1, %v4766_v35  ;;  %v1408_v11 = vsel %vm829_vm7, %v1391_v15, %v4758_v57 }
 0x127   : > { %5850 = vst [vmem:[#allocation29_spill] sm:$0xff] %v4763_v3  ;;  %v1405_v46 = vsel %vm829_vm7, %v4621_v0, %v4631_v51  ;;  %v1406_v56 = vsel %vm829_vm7, %v1389_v33, %v4763_v3  ;;  %v5692_v43 = vunpack.i.h.bf16 %v4554_v44  ;;  %3277 = vrot.lane.b32.xlu0 %v3276_v58, %s3348_s29  ;;  %v3286_v42 = vpack.i.bf16 %v1408_v11, %v1407_v54  ;;  %v4791_v30 = vpop.permute.xlu1 %964  ;;  %v4793_v16 = vpop.permute.xlu0 %3132 }
 0x128   : > { %3242 = vrot.lane.b32.xlu1 %v3241_v24, %s3348_s29  ;;  %v3251_v53 = vpack.i.bf16 %v1406_v56, %v1405_v46  ;;  %v1627_v27 = vsel %vm829_vm7, %v5852_v28, 0.0  ;;  %v5693_v7 = vunpack.i.h.bf16 %v4597_v59  ;;  %v1624_v0 = vsel %vm829_vm7, %v4308_v25, 0.0  ;;  %v5857_v56 = vld [vmem:[#allocation34_spill] sm:$0xff] }
 0x129   : > { %v1625_v33 = vsel %vm829_vm7, %v4311_v20, 0.0  ;;  %v1578_v1 = vsel %vm778_vm3, %v4353_v47, 0.0  ;;  %v5694_v15 = vunpack.i.h.bf16 %v4617_v48  ;;  %v1579_v58 = vsel %vm778_vm3, %v4356_v5, 0.0 }
 0x12a   : > { %v1543_v24 = vsel %vm744_vm1, %v4335_v55, 0.0  ;;  %v5853_v54 = vunpack.i.h.bf16 %v3855_v45  ;;  %v5854_v11 = vunpack.i.l.bf16 %v3855_v45  ;;  %v5855_v46 = vunpack.i.h.bf16 %v4515_v41 }
 0x12b   : > { %v5856_v20 = vunpack.i.l.bf16 %v4515_v41  ;;  %v3296_v28 = vpack.i.bf16 %v1627_v27, %v5857_v56  ;;  %v5858_v5 = vunpack.i.l.bf16 %v4554_v44  ;;  %3287 = vrot.lane.b32.xlu0 %v3286_v42, %s3349_s30  ;;  %v3261_v50 = vpack.i.bf16 %v1625_v33, %v1624_v0  ;;  %v3138_v56 = vpop.permute.xlu0 %3137  ;;  %v5862_v0 = vld [vmem:[#allocation12_spill] sm:$0xff] }
 0x12c   : > { %v439_v25 = vsel %vm426_vm9, %v5854_v11, %v5853_v54  ;;  %3252 = vrot.lane.b32.xlu1 %v3251_v53, %s3349_s30  ;;  %v1595_v54 = vsel %vm795_vm5, %v1578_v1, 0.0  ;;  %v5859_v11 = vunpack.i.l.bf16 %v4597_v59  ;;  %v1560_v42 = vsel %vm761_vm2, %v1543_v24, 0.0 }
 0x12d   : > { %v911_v47 = vsel %vm898_vm10, %v5856_v20, %v5855_v46  ;;  %v979_v55 = vsel %vm966_vm11, %v5858_v5, %v5692_v43  ;;  %v4831_v20 = vpop.permute.xlu1 %1032  ;;  %v1596_v5 = vsel %vm795_vm5, %v1579_v58, 0.0  ;;  %v5860_v43 = vld [vmem:[#allocation14_spill] sm:$0xff]  ;;  %v5863_v1 = vunpack.i.l.bf16 %v4617_v48 }
 0x12e   : > { %v1047_v46 = vsel %vm1034_vm12, %v5859_v11, %v5693_v7  ;;  %v4837_v53 = vsel %vm761_vm2, %v5860_v43, %v439_v25  ;;  %v1151_v33 = vsel %vm744_vm1, %v5862_v0, %v911_v47  ;;  %v5699_v7 = vunpack.i.h.bf16 %v4693_v19 }
 0x12f   : > { %5861 = vst [vmem:[#allocation31_spill] sm:$0xff] %v4837_v53  ;;  %v4846_v11 = vsel %vm560_vm13, %v5863_v1, %v5694_v15  ;;  %v1168_v58 = vsel %vm761_vm2, %v1151_v33, %v979_v55  ;;  %v3130_v24 = vunpack.i.h.bf16 %v4770_v2  ;;  %v3129_v27 = vunpack.i.l.bf16 %v4770_v2  ;;  %3297 = vrot.lane.b32.xlu0 %v3296_v28, %s3350_s4  ;;  %v5865_v55 = vld [vmem:[#allocation5_spill] sm:$0xff] }
 0x130   : > { %5864 = vst [vmem:[#allocation30_spill] sm:$0xff] %v4846_v11  ;;  %v4853_v43 = vsel %vm812_vm6, %v1595_v54, 0.0  ;;  %v1185_v25 = vsel %vm778_vm3, %v1168_v58, %v1047_v46  ;;  %3262 = vrot.lane.b32.xlu1 %v3261_v50, %s3350_s4  ;;  %v4859_v47 = vsel %vm812_vm6, %v1596_v5, 0.0  ;;  %v4862_v0 = vsel %vm778_vm3, %v1560_v42, 0.0  ;;  %v3143_v58 = vpop.permute.xlu0 %3142 }
 0x131   : > { %v4866_v33 = vsel %vm727_vm0, %v5865_v55, 0.0  ;;  %v1358_v2 = vsel %vm778_vm3, %v4837_v53, %v1047_v46  ;;  %v1202_v54 = vsel %vm795_vm5, %v1185_v25, %v4846_v11  ;;  %v5866_v28 = vunpack.i.h.bf16 %v4662_v22  ;;  %v4880_v1 = vpop.permute.xlu1 %558 }
 0x132   : > { %v5867_v50 = vunpack.i.l.bf16 %v4662_v22  ;;  %v1375_v55 = vsel %vm795_vm5, %v1358_v2, %v4846_v11  ;;  %v5869_v46 = vunpack.i.l.bf16 %v4693_v19  ;;  %v3135_v15 = vunpack.i.h.bf16 %v4793_v16 }
 0x133   : > { %v5870_v42 = vunpack.i.h.bf16 %v4515_v41  ;;  %v3140_v35 = vunpack.i.h.bf16 %v3138_v56  ;;  %v3139_v29 = vunpack.i.l.bf16 %v3138_v56  ;;  %v4911_v41 = vsel %vm727_vm0, %v4907_v63, 0.0 }
 0x134   : > { %v4877_v5 = vsel %vm627_vm14, %v5867_v50, %v5866_v28  ;;  %v1117_v25 = vsel %vm1104_vm15, %v5869_v46, %v5699_v7  ;;  %v3134_v28 = vunpack.i.l.bf16 %v4793_v16  ;;  %v914_v50 = vsel %vm898_vm10, %v3130_v24, %v4768_v36  ;;  %v5871_v46 = vld [vmem:[#allocation7_spill] sm:$0xff]  ;;  %v5872_v16 = vld [vmem:[#allocation8_spill] sm:$0xff] }
 0x135   : > { %5868 = vst [vmem:[#allocation4_spill] sm:$0xff] %v4877_v5  ;;  %v912_v57 = vsel %vm898_vm10, %v5870_v42, %v3129_v27  ;;  %v1219_v2 = vsel %vm812_vm6, %v1202_v54, %v4877_v5  ;;  %v4900_v61 = vsel %vm812_vm6, %v1375_v55, %v4877_v5  ;;  %3302 = vrot.lane.b32.xlu0 %v5871_v46, %s3347_s28  ;;  %v3145_v7 = vunpack.i.h.bf16 %v3143_v58  ;;  %v4921_v5 = vpop.permute.xlu1 %625 }
 0x136   : > { %3272 = vrot.lane.b32.xlu1 %v5872_v16, %s3347_s28  ;;  %v5873_v56 = vunpack.i.h.bf16 %v4734_v17  ;;  %v5874_v54 = vunpack.i.l.bf16 %v4734_v17  ;;  %v913_v55 = vsel %vm898_vm10, %v3129_v27, %v3130_v24  ;;  %v3144_v46 = vunpack.i.l.bf16 %v3143_v58  ;;  %v3148_v16 = vpop.permute.xlu0 %3147 }
 0x137   : > { %v4924_v11 = vsel %vm829_vm7, %v1219_v2, %v1117_v25  ;;  %v1154_v53 = vsel %vm744_vm1, %v5875_v9, %v914_v50  ;;  %v1152_v51 = vsel %vm744_vm1, %v5876_v18, %v912_v57  ;;  %v982_v3 = vsel %vm966_vm11, %v3135_v15, %v4791_v30  ;;  %v5879_v50 = vld [vmem:[#allocation15_spill] sm:$0xff] }
 0x138   : > { %v4918_v42 = vsel %vm694_vm4, %v5874_v54, %v5873_v56  ;;  %v5877_v56 = vunpack.i.h.bf16 %v4554_v44  ;;  %v981_v24 = vsel %vm966_vm11, %v3134_v28, %v3135_v15  ;;  %v1050_v58 = vsel %vm1034_vm12, %v3140_v35, %v4831_v20 }
 0x139   : > { %v5878_v25 = vunpack.i.h.bf16 %v4597_v59  ;;  %v3150_v9 = vunpack.i.h.bf16 %v3148_v16  ;;  %v1153_v18 = vsel %vm744_vm1, %v5879_v50, %v913_v55  ;;  %v1049_v57 = vsel %vm1034_vm12, %v3139_v29, %v3140_v35  ;;  %v4958_v55 = vpop.permute.xlu1 %424 }
 0x13a   : > { %v980_v27 = vsel %vm966_vm11, %v5877_v56, %v3134_v28  ;;  %v4946_v44 = vsel %vm560_vm13, %v3145_v7, %v4880_v1  ;;  %v3149_v54 = vunpack.i.l.bf16 %v3148_v16  ;;  %v1171_v28 = vsel %vm761_vm2, %v1154_v53, %v982_v3 }
 0x13b   : > { %v1048_v2 = vsel %vm1034_vm12, %v5878_v25, %v3139_v29  ;;  %5880 = vst [vmem:[#allocation33_spill] sm:$0xff] %v4946_v44  ;;  %v1169_v15 = vsel %vm761_vm2, %v1152_v51, %v980_v27  ;;  %v5881_v56 = vunpack.i.h.bf16 %v4617_v48  ;;  %v4956_v25 = vsel %vm560_vm13, %v3144_v46, %v3145_v7  ;;  %v3153_v29 = vpop.permute.xlu0 %3152 }
 0x13c   : > { %5882 = vst [vmem:[#allocation34_spill] sm:$0xff] %v4956_v25  ;;  %v1170_v35 = vsel %vm761_vm2, %v1153_v18, %v981_v24  ;;  %v1186_v50 = vsel %vm778_vm3, %v1169_v15, %v1048_v2  ;;  %v1188_v16 = vsel %vm778_vm3, %v1171_v28, %v1050_v58  ;;  %v3155_v51 = vunpack.i.h.bf16 %v3153_v29 }
 0x13d   : > { %v4953_v59 = vsel %vm560_vm13, %v5881_v56, %v3144_v46  ;;  %v1187_v3 = vsel %vm778_vm3, %v1170_v35, %v1049_v57  ;;  %v1205_v48 = vsel %vm795_vm5, %v1188_v16, %v4946_v44  ;;  %v4968_v53 = vsel %vm627_vm14, %v3150_v9, %v4921_v5 }
 0x13e   : > { %v3154_v7 = vunpack.i.l.bf16 %v3153_v29  ;;  %v1203_v46 = vsel %vm795_vm5, %v1186_v50, %v4953_v59  ;;  %v1204_v27 = vsel %vm795_vm5, %v1187_v3, %v4956_v25  ;;  %v5883_v24 = vunpack.i.h.bf16 %v4662_v22  ;;  %v5885_v50 = vld [vmem:[#allocation18_spill] sm:$0xff]  ;;  %v4992_v22 = vpop.permute.xlu1 %1102 }
 0x13f   : > { %v442_v15 = vsel %vm426_vm9, %v3155_v51, %v4958_v55  ;;  %v4982_v28 = vsel %vm627_vm14, %v3149_v54, %v3150_v9  ;;  %v5884_v56 = vunpack.i.h.bf16 %v3855_v45  ;;  %v3158_v3 = vpop.permute.xlu0 %3157 }
 0x140   : > { %v4977_v18 = vsel %vm627_vm14, %v5883_v24, %v3149_v54  ;;  %v441_v35 = vsel %vm426_vm9, %v3154_v7, %v3155_v51  ;;  %v4990_v16 = vsel %vm761_vm2, %v5885_v50, %v442_v15  ;;  %v1222_v24 = vsel %vm812_vm6, %v1205_v48, %v4968_v53  ;;  %v5888_v54 = vld [vmem:[#allocation20_spill] sm:$0xff] }
 0x141   : > { %v440_v29 = vsel %vm426_vm9, %v5884_v56, %v3154_v7  ;;  %5886 = vst [vmem:[#allocation14_spill] sm:$0xff] %v4990_v16  ;;  %v5002_v45 = vsel %vm761_vm2, %v5888_v54, %v441_v35  ;;  %v1361_v51 = vsel %vm778_vm3, %v4990_v16, %v1050_v58  ;;  %v3160_v56 = vunpack.i.h.bf16 %v3158_v3 }
 0x142   : > { %v4998_v9 = vsel %vm761_vm2, %v5887_v4, %v440_v29  ;;  %v1360_v15 = vsel %vm778_vm3, %v5002_v45, %v1049_v57  ;;  %v3159_v50 = vunpack.i.l.bf16 %v3158_v3  ;;  %v1220_v48 = vsel %vm812_vm6, %v1203_v46, %v4977_v18 }
 0x143   : > { %v1359_v7 = vsel %vm778_vm3, %v4998_v9, %v1048_v2  ;;  %v1377_v4 = vsel %vm795_vm5, %v1360_v15, %v4956_v25  ;;  %v1378_v29 = vsel %vm795_vm5, %v1361_v51, %v4946_v44  ;;  %v1221_v2 = vsel %vm812_vm6, %v1204_v27, %v4982_v28  ;;  %v3163_v54 = vpop.permute.xlu0 %3162  ;;  %v5029_v44 = vpop.permute.xlu1 %692 }
 0x144   : > { %v1376_v58 = vsel %vm795_vm5, %v1359_v7, %v4953_v59  ;;  %v1120_v57 = vsel %vm1104_vm15, %v3160_v56, %v4992_v22  ;;  %v5889_v35 = vunpack.i.h.bf16 %v4693_v19  ;;  %v1119_v46 = vsel %vm1104_vm15, %v3159_v50, %v3160_v56 }
 0x145   : > { %v3165_v15 = vunpack.i.h.bf16 %v3163_v54  ;;  %v3164_v16 = vunpack.i.l.bf16 %v3163_v54  ;;  %v1238_v51 = vsel %vm829_vm7, %v1221_v2, %v1119_v46  ;;  %v1394_v7 = vsel %vm812_vm6, %v1377_v4, %v4982_v28 }
 0x146   : > { %v1118_v3 = vsel %vm1104_vm15, %v5889_v35, %v3159_v50  ;;  %v1239_v27 = vsel %vm829_vm7, %v1222_v24, %v1120_v57  ;;  %v1395_v19 = vsel %vm812_vm6, %v1378_v29, %v4968_v53  ;;  %v1393_v56 = vsel %vm812_vm6, %v1376_v58, %v4977_v18 }
 0x147   : > { %v1237_v25 = vsel %vm829_vm7, %v1220_v48, %v1118_v3  ;;  %v5039_v50 = vsel %vm694_vm4, %v3165_v15, %v5029_v44  ;;  %v5890_v2 = vunpack.i.h.bf16 %v4734_v17  ;;  %v5047_v35 = vsel %vm694_vm4, %v3164_v16, %v3165_v15 }
 0x148   : > { %v3306_v24 = vpack.i.bf16 %v1239_v27, %v1238_v51  ;;  %v3281_v48 = vpack.i.bf16 %v1237_v25, %v4924_v11  ;;  %v1411_v29 = vsel %vm829_vm7, %v1394_v7, %v5047_v35  ;;  %v1412_v58 = vsel %vm829_vm7, %v1395_v19, %v5039_v50  ;;  %v5076_v7 = vpop.permute.xlu0 %3167  ;;  %v5891_v27 = vld [vmem:[#allocation9_spill] sm:$0xff] }
 0x149   : > { %v5044_v4 = vsel %vm694_vm4, %v5890_v2, %v3164_v16  ;;  %v1409_v17 = vsel %vm829_vm7, %v4900_v61, %v4918_v42  ;;  %v1594_v16 = vsel %vm795_vm5, %v4862_v0, 0.0  ;;  %v3311_v11 = vpack.i.bf16 %v1412_v58, %v1411_v29 }
 0x14a   : > { %v1410_v57 = vsel %vm829_vm7, %v1393_v56, %v5044_v4  ;;  %3307 = vrot.lane.b32.xlu0 %v3306_v24, %s3348_s29  ;;  %3282 = vrot.lane.b32.xlu1 %v3281_v48, %s3348_s29  ;;  %v1629_v3 = vsel %vm829_vm7, %v4853_v43, 0.0  ;;  %v1630_v46 = vsel %vm829_vm7, %v4859_v47, 0.0  ;;  %v1546_v54 = vsel %vm744_vm1, %v4866_v33, 0.0  ;;  %v5089_v48 = vpop.permute.xlu1 %3172 }
 0x14b   : > { %v3291_v25 = vpack.i.bf16 %v1410_v57, %v1409_v17  ;;  %v1547_v15 = vsel %vm744_vm1, %v4911_v41, 0.0  ;;  %v1611_v61 = vsel %vm812_vm6, %v1594_v16, 0.0  ;;  %v3316_v0 = vpack.i.bf16 %v1630_v46, %v1629_v3  ;;  %v5892_v41 = vld [vmem:[#allocation13_spill] sm:$0xff] }
 0x14c   : > { %v1563_v51 = vsel %vm761_vm2, %v1546_v54, 0.0  ;;  %v1564_v43 = vsel %vm761_vm2, %v1547_v15, 0.0  ;;  %v1628_v47 = vsel %vm829_vm7, %v1611_v61, 0.0  ;;  %v1138_v33 = vsel %vm727_vm0, %v4907_v63, %v5891_v27 }
 0x14d   : > { %v1344_v19 = vsel %vm744_vm1, %v1138_v33, %v5892_v41  ;;  %v1580_v56 = vsel %vm778_vm3, %v1563_v51, 0.0  ;;  %v1581_v2 = vsel %vm778_vm3, %v1564_v43, 0.0  ;;  %v3170_v29 = vunpack.i.h.bf16 %v5076_v7 }
 0x14e   : > { %3312 = vrot.lane.b32.xlu0 %v3311_v11, %s3349_s30  ;;  %3292 = vrot.lane.b32.xlu1 %v3291_v25, %s3349_s30  ;;  %v1345_v24 = vsel %vm761_vm2, %v1344_v19, %v4958_v55  ;;  %v3169_v58 = vunpack.i.l.bf16 %v5076_v7  ;;  %vm493_vm0 = vcmask 1014784   ;;  %v1155_v57 = vsel %vm744_vm1, %v1138_v33, %v4768_v36  ;;  %v5140_v19 = vpop.permute.xlu0 %3177 }
 0x14f   : > { %v1597_v17 = vsel %vm795_vm5, %v1580_v56, 0.0  ;;  %v1598_v16 = vsel %vm795_vm5, %v1581_v2, 0.0  ;;  %v1172_v11 = vsel %vm761_vm2, %v1155_v57, %v4791_v30  ;;  %v1362_v55 = vsel %vm778_vm3, %v1345_v24, %v4831_v20 }
 0x150   : > { %v3175_v25 = vunpack.i.h.bf16 %v5089_v48  ;;  %v3174_v3 = vunpack.i.l.bf16 %v5089_v48  ;;  %v1189_v46 = vsel %vm778_vm3, %v1172_v11, %v4831_v20  ;;  %v495_v36 = vsel %vm493_vm0, %v3169_v58, %v3170_v29 }
 0x151   : > { %v1206_v30 = vsel %vm795_vm5, %v1189_v46, %v4880_v1  ;;  %v1379_v15 = vsel %vm795_vm5, %v1362_v55, %v4880_v1  ;;  %v1614_v61 = vsel %vm812_vm6, %v1597_v17, 0.0  ;;  %v1615_v20 = vsel %vm812_vm6, %v1598_v16, 0.0  ;;  %v5893_v17 = vld [vmem:[#allocation40_spill] sm:$0xff]  ;;  %v5895_v46 = vld [vmem:[#allocation42_spill] sm:$0xff] }
 0x152   : > { %3317 = vrot.lane.b32.xlu0 %v3316_v0, %s3350_s4  ;;  %1674 = vrot.lane.b32.xlu1 %v1628_v47, %s3350_s4  ;;  %v1223_v54 = vsel %vm812_vm6, %v1206_v30, %v4921_v5  ;;  %v496_v51 = vsel %vm493_vm0, %v3170_v29, %v3174_v3  ;;  %v780_v43 = vsel %vm778_vm3, %v4011_v21, %v495_v36  ;;  %v1631_v1 = vsel %vm829_vm7, %v1614_v61, 0.0  ;;  %v5894_v55 = vld [vmem:[#allocation48_spill] sm:$0xff] }
 0x153   : > { %v1240_v0 = vsel %vm829_vm7, %v1223_v54, %v4992_v22  ;;  %v1632_v47 = vsel %vm829_vm7, %v1615_v20, 0.0  ;;  %v1396_v27 = vsel %vm812_vm6, %v1379_v15, %v4921_v5  ;;  %v781_v22 = vsel %vm778_vm3, %v4000_v26, %v496_v51  ;;  %v3183_v2 = vpop.permute.xlu1 %3182  ;;  %v1800_v15 = vld [vmem:[%s5626_s2] sm:$0xff]  ;;  %v1801_v61 = vld [vmem:[%s5626_s2 + $0x8] sm:$0xff] }
 0x154   : > { %v797_v33 = vsel %vm795_vm5, %v780_v43, %v4131_v49  ;;  %v1413_v21 = vsel %vm829_vm7, %v1396_v27, %v5029_v44  ;;  %v3321_v56 = vpack.i.bf16 %v1632_v47, %v1631_v1  ;;  %vm1292_vm1 = vcmask 891904   ;;  %v5896_v1 = vld [vmem:[#allocation32_spill] sm:$0xff] }
 0x155   : > { %v814_v5 = vsel %vm812_vm6, %v797_v33, %v4146_v10  ;;  %v798_v49 = vsel %vm795_vm5, %v781_v22, %v4126_v8  ;;  %v3184_v24 = vunpack.i.l.bf16 %v3183_v2  ;;  %v3352_v20 = vmov 0   ;;  %v5897_v22 = vld [vmem:[#allocation45_spill] sm:$0xff] }
 0x156   : > { %491 = vrot.lane.b32.xlu1 %v4907_v63, %s3347_s28  ;;  %v497_v63 = vsel %vm493_vm0, %v3174_v3, %v3175_v25  ;;  %v831_v29 = vsel %vm829_vm7, %v814_v5, %v4225_v23  ;;  %3326 = vset.pattern.permute.xlu0 %v3352_v20  ;;  %vm1684_vm2 = vcmask 490496   ;;  %vm1818_vm9 = vcmask 261120  }
 0x157   : > { %v782_v41 = vsel %vm778_vm3, %v4035_v37, %v497_v63  ;;  %v3185_v37 = vunpack.i.h.bf16 %v3183_v2  ;;  %v5150_v44 = vpop.permute.xlu0 %3187  ;;  %3327 = vset.pattern.permute.xlu1 %v3352_v20  ;;  %1805 = vperm.xlu0 %3326, %v1800_v15   ;;  %v3179_v63 = vunpack.i.l.bf16 %v5140_v19 }
 0x158   : > { %v799_v26 = vsel %vm795_vm5, %v782_v41, %v4156_v60  ;;  %v815_v60 = vsel %vm812_vm6, %v798_v49, %v5893_v17  ;;  %v3190_v16 = vunpack.i.h.bf16 %v5150_v44  ;;  %v3189_v8 = vunpack.i.l.bf16 %v5150_v44  ;;  %v5903_v44 = vld [vmem:[#allocation47_spill] sm:$0xff] }
 0x159   : > { %v1294_v57 = vsel %vm1292_vm1, %v3184_v24, %v3185_v37  ;;  %v816_v10 = vsel %vm812_vm6, %v799_v26, %v4180_v12  ;;  %v832_v36 = vsel %vm829_vm7, %v815_v60, %v5895_v46  ;;  %v494_v43 = vsel %vm493_vm0, %v3179_v63, %v3169_v58  ;;  %v5898_v26 = vld [vmem:[#allocation46_spill] sm:$0xff] }
 0x15a   : > { %1290 = vrot.lane.b32.xlu1 %v1240_v0, %s3348_s29  ;;  %v2676_v11 = vpack.c.bf16 %v1294_v57, %v831_v29  ;;  %v833_v3 = vsel %vm829_vm7, %v816_v10, %v5894_v55  ;;  %v1296_v23 = vsel %vm1292_vm1, %v3189_v8, %v3190_v16  ;;  %v1295_v12 = vsel %vm1292_vm1, %v3185_v37, %v3189_v8  ;;  %v1802_v0 = vld [vmem:[%s5626_s2 + $0x10] sm:$0xf]  ;;  %v5899_v57 = vld [vmem:[#allocation39_spill] sm:$0xff] }
 0x15b   : > { %v2684_v30 = vpack.c.bf16 %v1296_v23, %v833_v3  ;;  %v2686_v54 = vpack.c.bf16 %v1295_v12, %v832_v36  ;;  %v779_v47 = vsel %vm778_vm3, %v5896_v1, %v494_v43  ;;  %v3180_v58 = vunpack.i.h.bf16 %v5140_v19 }
 0x15c   : > { %2677 = vmatprep.subr.bf16.mxu0 %v2676_v11  ;;  %v3198_v51 = vpop.permute.xlu0 %3197  ;;  %v796_v33 = vsel %vm795_vm5, %v779_v47, %v5897_v22 }
 0x15d   : > { %2685 = vmatprep.subr.bf16.mxu1 %v2684_v30  ;;  %v3199_v2 = vunpack.i.l.bf16 %v3198_v51  ;;  %v813_v49 = vsel %vm812_vm6, %v796_v33, %v5898_v26  ;;  %v498_v23 = vsel %vm493_vm0, %v3175_v25, %v3180_v58  ;;  %v5900_v30 = vld [vmem:[#allocation36_spill] sm:$0xff] }
 0x15e   : > { %1463 = vrot.lane.b32.xlu1 %v1413_v21, %s3349_s30  ;;  %2687 = vmatpush1.bf16.msra.mxu1 %v2686_v54  ;;  %v830_v10 = vsel %vm829_vm7, %v813_v49, %v5899_v57  ;;  %v783_v54 = vsel %vm778_vm3, %v5900_v30, %v498_v23  ;;  %v5901_v49 = vld [vmem:[#allocation38_spill] sm:$0xff] }
 0x162   : > { %3322 = vrot.lane.b32.xlu1 %v3321_v56, %s3350_s4  ;;  %v3200_v56 = vunpack.i.h.bf16 %v3198_v51 }
 0x164   : > { %v3208_v27 = vpop.permute.xlu0 %3207  ;;  %v1467_v11 = vsel %vm1465_vm8, %v3199_v2, %v3200_v56 }
 0x165   : > { %v3210_v41 = vunpack.i.h.bf16 %v3208_v27  ;;  %v3209_v21 = vunpack.i.l.bf16 %v3208_v27 }
 0x166   : > { %1810 = vperm.xlu1 %3327, %v1801_v61  }
 0x167   : > { %v1686_v29 = vsel %vm1684_vm2, %v3209_v21, %v3210_v41 }
 0x168   : > { %v2680_v55 = vpack.c.bf16 %v1686_v29, %v1467_v11 }
 0x16a   : > { %1815 = vperm.xlu1 %3327, %v1802_v0  }
 0x17b   : > { %v3193_v5 = vpop.permute.xlu1 %3192 }
 0x17c   : > { %v3194_v37 = vunpack.i.l.bf16 %v3193_v5  ;;  %v5188_v7 = vpop.permute.xlu0 %3217  ;;  %v3195_v27 = vunpack.i.h.bf16 %v3193_v5 }
 0x17d   : > { %v3219_v25 = vunpack.i.l.bf16 %v5188_v7 }
 0x17e   : > { %v1293_v17 = vsel %vm1292_vm1, %v3194_v37, %v3184_v24  ;;  %v800_v37 = vsel %vm795_vm5, %v783_v54, %v5901_v49 }
 0x17f   : > { %v2678_v8 = vpack.c.bf16 %v1293_v17, %v830_v10  ;;  %v5902_v10 = vld [vmem:[#allocation41_spill] sm:$0xff] }
 0x180   : > { %v817_v17 = vsel %vm812_vm6, %v800_v37, %v5902_v10 }
 0x181   : > { %v5195_v60 = vpop.permute.xlu1 %3202  ;;  %v3228_v3 = vpop.permute.xlu0 %3227  ;;  %2679 = vmatpush1.bf16.msra.mxu0 %v2678_v8 }
 0x182   : > { %v3205_v19 = vunpack.i.h.bf16 %v5195_v60  ;;  %v3204_v46 = vunpack.i.l.bf16 %v5195_v60  ;;  %v3229_v36 = vunpack.i.l.bf16 %v3228_v3  ;;  %2681 = vmatprep.subr.bf16.mxu0 %v2680_v55  ;;  %v3230_v57 = vunpack.i.h.bf16 %v3228_v3 }
 0x184   : > { %v499_v24 = vsel %vm493_vm0, %v3180_v58, %v3229_v36  ;;  %v1469_v63 = vsel %vm1465_vm8, %v3204_v46, %v3205_v19  ;;  %v1468_v1 = vsel %vm1465_vm8, %v3200_v56, %v3204_v46 }
 0x185   : > { %v3213_v12 = vpop.permute.xlu1 %3212  ;;  %v784_v48 = vsel %vm778_vm3, %v5801_v32, %v499_v24  ;;  %v5208_v20 = vpop.permute.xlu0 %3237  ;;  %v500_v24 = vsel %vm493_vm0, %v3229_v36, %v3230_v57 }
 0x186   : > { %v3215_v15 = vunpack.i.h.bf16 %v3213_v12  ;;  %v3214_v61 = vunpack.i.l.bf16 %v3213_v12  ;;  %v3239_v0 = vunpack.i.l.bf16 %v5208_v20  ;;  %v801_v51 = vsel %vm795_vm5, %v784_v48, %v4480_v31 }
 0x187   : > { %v818_v32 = vsel %vm812_vm6, %v801_v51, %v4488_v6  ;;  %v1466_v6 = vsel %vm1465_vm8, %v3219_v25, %v3199_v2  ;;  %v3220_v2 = vunpack.i.h.bf16 %v5188_v7  ;;  %v5904_v48 = vmov 0.0  }
 0x188   : > { %v1688_v43 = vsel %vm1684_vm2, %v3214_v61, %v3215_v15  ;;  %v1687_v47 = vsel %vm1684_vm2, %v3210_v41, %v3214_v61  ;;  %v835_v31 = vsel %vm829_vm7, %v818_v32, %v4509_v34  ;;  %v1298_v41 = vsel %vm1292_vm1, %v3195_v27, %v3239_v0 }
 0x189   : > { %v2688_v33 = vpack.c.bf16 %v1688_v43, %v1469_v63  ;;  %v2690_v26 = vpack.c.bf16 %v1687_v47, %v1468_v1  ;;  %v5224_v29 = vpop.permute.xlu0 %3247  ;;  %v2692_v5 = vpack.c.bf16 %v1298_v41, %v835_v31  ;;  %v1297_v34 = vsel %vm1292_vm1, %v3190_v16, %v3195_v27 }
 0x18a   : > { %v3223_v22 = vpop.permute.xlu1 %3222  ;;  %v3249_v8 = vunpack.i.l.bf16 %v5224_v29  ;;  %v834_v16 = vsel %vm829_vm7, %v817_v17, %v5903_v44  ;;  %v785_v63 = vsel %vm778_vm3, %v5809_v38, %v500_v24  ;;  %v5278_v38 = vld [vmem:[%s5625_s1 + $0x8] sm:$0xff] }
 0x18b   : > { %v3224_v58 = vunpack.i.l.bf16 %v3223_v22  ;;  %2689 = vmatprep.subr.bf16.mxu1 %v2688_v33  ;;  %v3225_v3 = vunpack.i.h.bf16 %v3223_v22  ;;  %v2694_v25 = vpack.c.bf16 %v1297_v34, %v834_v16  ;;  %v5913_v16 = vld [vmem:[#allocation27_spill] sm:$0xff] }
 0x18c   : > { %2691 = vmatpush1.bf16.msra.mxu1 %v2690_v26  ;;  %v1471_v7 = vsel %vm1465_vm8, %v3220_v2, %v3249_v8 }
 0x18d   : > { %v1685_v56 = vsel %vm1684_vm2, %v3224_v58, %v3209_v21  ;;  %v5244_v21 = vld [vmem:[%s5625_s1] sm:$0xff]  ;;  %v1689_v51 = vsel %vm1684_vm2, %v3215_v15, %v3225_v3 }
 0x18e   : > { %v3233_v11 = vpop.permute.xlu1 %3232  ;;  %v2682_v55 = vpack.c.bf16 %v1685_v56, %v1466_v6  ;;  %v5907_v58 = vld [vmem:[#allocation35_spill] sm:$0xff] }
 0x18f   : > { %v3235_v23 = vunpack.i.h.bf16 %v3233_v11  ;;  %v3234_v46 = vunpack.i.l.bf16 %v3233_v11  ;;  %2653 = vmatmul.mubr.msk.f32.vlgmr.msra.gmra.mrb[0].mxu1 %vm1818_vm9, %v5244_v21 }
 0x190   : > { %v5239_v12 = vpop.permute.xlu0 %3257  ;;  %2683 = vmatpush1.bf16.msra.mxu0 %v2682_v55  ;;  %1981 = vmatprep.mubr.f32.mxu1 %v5904_v48  ;;  %v5910_v55 = vld [vmem:[#allocation29_spill] sm:$0xff] }
 0x191   : > { %v3259_v30 = vunpack.i.l.bf16 %v5239_v12  ;;  %v501_v54 = vsel %vm493_vm0, %v3230_v57, %v3234_v46  ;;  %v502_v61 = vsel %vm493_vm0, %v3234_v46, %v3235_v23  ;;  %2693 = vmatprep.subr.bf16.mxu0 %v2692_v5  ;;  %v5908_v57 = vld [vmem:[#allocation24_spill] sm:$0xff]  ;;  %v5909_v5 = vld [vmem:[#allocation21_spill] sm:$0xff] }
 0x192   : > { %v787_v43 = vsel %vm778_vm3, %v4288_v14, %v502_v61  ;;  %v786_v32 = vsel %vm778_vm3, %v4284_v62, %v501_v54  ;;  %v1470_v14 = vsel %vm1465_vm8, %v3205_v19, %v3220_v2  ;;  %v802_v62 = vsel %vm795_vm5, %v785_v63, %v4535_v39  ;;  %v5905_v19 = vld [vmem:[#allocation28_spill] sm:$0xff]  ;;  %v5912_v2 = vld [vmem:[#allocation3_spill] sm:$0xff] }
 0x193   : > { %v1690_v36 = vsel %vm1684_vm2, %v3225_v3, %v3259_v30  ;;  %2650 = vmatmul.mubr.msk.f32.vlgmr.msra.gmra.mrb[0].mxu0 %vm1818_vm9, %v5244_v21  ;;  %2654 = vmatmul.mubr.msk.f32.gmra.mrb[2].mxu1 %vm1818_vm9, %v5278_v38  ;;  %v2698_v15 = vpack.c.bf16 %v1689_v51, %v1470_v14  ;;  %v804_v22 = vsel %vm795_vm5, %v787_v43, %v4529_v13  ;;  %v3240_v39 = vunpack.i.h.bf16 %v5208_v20  ;;  %v5304_v13 = vld [vmem:[%s5625_s1 + $0x10] sm:$0xf] }
 0x194   : > { %v5269_v1 = vpop.permute.xlu0 %3267  ;;  %v2696_v47 = vpack.c.bf16 %v1690_v36, %v1471_v7  ;;  %2695 = vmatpush1.bf16.msra.mxu0 %v2694_v25  ;;  %1898 = vmatprep.mubr.f32.mxu0 %v5904_v48  ;;  %v803_v26 = vsel %vm795_vm5, %v786_v32, %v5905_v19  ;;  %v821_v31 = vsel %vm812_vm6, %v804_v22, %v5907_v58  ;;  %v5911_v3 = vld [vmem:[#allocation37_spill] sm:$0xff]  ;;  %v3260_v43 = vunpack.i.h.bf16 %v5239_v12 }
 0x195   : > { %v3269_v27 = vunpack.i.l.bf16 %v5269_v1  ;;  %1987 = vmatprep.mubr.f32.mxu1 %v5904_v48  ;;  %v820_v10 = vsel %vm812_vm6, %v803_v26, %v5909_v5  ;;  %v1299_v46 = vsel %vm1292_vm1, %v3239_v0, %v3240_v39  ;;  %v838_v24 = vsel %vm829_vm7, %v821_v31, %v5912_v2 }
 0x196   : > { %2697 = vmatprep.subr.bf16.mxu0 %v2696_v47  ;;  %v837_v54 = vsel %vm829_vm7, %v820_v10, %v5913_v16  ;;  %v1691_v26 = vsel %vm1684_vm2, %v3259_v30, %v3260_v43  ;;  %v3270_v10 = vunpack.i.h.bf16 %v5269_v1  ;;  %v5915_v1 = vld [vmem:[#allocation31_spill] sm:$0xff] }
 0x197   : > { %v503_v33 = vsel %vm493_vm0, %v3235_v23, %v3269_v27  ;;  %2651 = vmatmul.mubr.msk.f32.gmra.mrb[2].mxu0 %vm1818_vm9, %v5278_v38  ;;  %2655 = vmatmul.mubr.msk.f32.gmra.mrb[4].mxu1 %vm1818_vm9, %v5304_v13  ;;  %v5917_v16 = vld [vmem:[#allocation11_spill] sm:$0xff] }
 0x198   : > { %v788_v60 = vsel %vm778_vm3, %v4292_v40, %v503_v33  ;;  %2699 = vmatpush1.bf16.msra.mxu0 %v2698_v15  ;;  %1904 = vmatprep.mubr.f32.mxu0 %v5904_v48  ;;  %v5906_v40 = vld [vmem:[#allocation22_spill] sm:$0xff] }
 0x199   : > { %v805_v49 = vsel %vm795_vm5, %v788_v60, %v4681_v52  ;;  %v819_v37 = vsel %vm812_vm6, %v802_v62, %v5906_v40  ;;  %v5316_v6 = vpop.permute.xlu0 %3277  ;;  %2141 = vmatprep.mubr.f32.mxu1 %v5904_v48  ;;  %v3250_v62 = vunpack.i.h.bf16 %v5224_v29 }
 0x19a   : > { %v822_v41 = vsel %vm812_vm6, %v805_v49, %v5908_v57  ;;  %v3243_v56 = vpop.permute.xlu1 %3242  ;;  %v3279_v52 = vunpack.i.l.bf16 %v5316_v6  ;;  %v836_v23 = vsel %vm829_vm7, %v819_v37, %v5911_v3 }
 0x19b   : > { %v3245_v17 = vunpack.i.h.bf16 %v3243_v56  ;;  %v3244_v11 = vunpack.i.l.bf16 %v3243_v56  ;;  %2652 = vmatmul.mubr.msk.f32.gmra.mrb[4].mxu0 %vm1818_vm9, %v5304_v13  ;;  %v839_v34 = vsel %vm829_vm7, %v822_v41, %v5910_v55  ;;  %v2702_v51 = vpack.c.bf16 %v1299_v46, %v836_v23  ;;  %v5914_v23 = vld [vmem:[#allocation43_spill] sm:$0xff] }
 0x19c   : > { %2058 = vmatprep.mubr.f32.mxu0 %v5904_v48  ;;  %v1472_v30 = vsel %vm1465_vm8, %v3249_v8, %v3250_v62  ;;  %v504_v55 = vsel %vm493_vm0, %v3269_v27, %v3270_v10 }
 0x19d   : > { %v1301_v44 = vsel %vm1292_vm1, %v3244_v11, %v3245_v17  ;;  %v1300_v61 = vsel %vm1292_vm1, %v3240_v39, %v3244_v11  ;;  %v1302_v25 = vsel %vm1292_vm1, %v3245_v17, %v3279_v52  ;;  %v5341_v20 = vpop.permute.xlu0 %3287  ;;  %v2706_v56 = vpack.c.bf16 %v1691_v26, %v1472_v30 }
 0x19e   : > { %v2710_v7 = vpack.c.bf16 %v1301_v44, %v838_v24  ;;  %v3253_v0 = vpop.permute.xlu1 %3252  ;;  %v2700_v36 = vpack.c.bf16 %v1300_v61, %v837_v54  ;;  %v2708_v63 = vpack.c.bf16 %v1302_v25, %v839_v34  ;;  %v3289_v14 = vunpack.i.l.bf16 %v5341_v20  ;;  %v5916_v24 = vld [vmem:[#allocation44_spill] sm:$0xff]  ;;  %v5918_v25 = vld [vmem:[#allocation30_spill] sm:$0xff] }
 0x19f   : > { %2656 = vmatmul.mubr.msk.f32.vlgmr.msra.gmra.mrb[6].mxu0 %vm1818_vm9, %v5244_v21  ;;  %v3255_v47 = vunpack.i.h.bf16 %v3253_v0  ;;  %v3254_v32 = vunpack.i.l.bf16 %v3253_v0  ;;  %v789_v46 = vsel %vm778_vm3, %v5914_v23, %v504_v55  ;;  %v5919_v0 = vld [vmem:[#allocation10_spill] sm:$0xff] }
 0x1a0   : > { %2701 = vmatprep.subr.bf16.mxu1 %v2700_v36  ;;  %2709 = vmatprep.subr.bf16.mxu0 %v2708_v63  ;;  %v806_v54 = vsel %vm795_vm5, %v789_v46, %v5917_v16  ;;  %v3280_v63 = vunpack.i.h.bf16 %v5316_v6 }
 0x1a1   : > { %2703 = vmatpush1.bf16.msra.mxu1 %v2702_v51  ;;  %2711 = vmatpush1.bf16.msra.mxu0 %v2710_v7  ;;  %v5348_v15 = vpop.permute.xlu0 %3297  ;;  %v1474_v39 = vsel %vm1465_vm8, %v3254_v32, %v3255_v47  ;;  %v1473_v49 = vsel %vm1465_vm8, %v3250_v62, %v3254_v32  ;;  %v1475_v58 = vsel %vm1465_vm8, %v3255_v47, %v3289_v14  ;;  %v5920_v51 = vld [vmem:[#allocation23_spill] sm:$0xff]  ;;  %v5921_v32 = vld [vmem:[#allocation4_spill] sm:$0xff] }
 0x1a2   : > { %v3263_v22 = vpop.permute.xlu1 %3262  ;;  %2064 = vmatprep.mubr.f32.mxu0 %v5904_v48  ;;  %v3299_v33 = vunpack.i.l.bf16 %v5348_v15 }
 0x1a3   : > { %v3265_v60 = vunpack.i.h.bf16 %v3263_v22  ;;  %v3264_v19 = vunpack.i.l.bf16 %v3263_v22  ;;  %2657 = vmatmul.mubr.msk.f32.gmra.mrb[8].mxu0 %vm1818_vm9, %v5278_v38 }
 0x1a4   : > { %2070 = vmatprep.mubr.f32.mxu0 %v5904_v48 }
 0x1a5   : > { %v1693_v40 = vsel %vm1684_vm2, %v3264_v19, %v3265_v60  ;;  %v1692_v37 = vsel %vm1684_vm2, %v3260_v43, %v3264_v19  ;;  %v1694_v12 = vsel %vm1684_vm2, %v3265_v60, %v3299_v33  ;;  %v5922_v19 = vld [vmem:[#allocation26_spill] sm:$0xff] }
 0x1a6   : > { %v2714_v31 = vpack.c.bf16 %v1693_v40, %v1474_v39  ;;  %v2704_v57 = vpack.c.bf16 %v1692_v37, %v1473_v49  ;;  %v2712_v41 = vpack.c.bf16 %v1694_v12, %v1475_v58  ;;  %v5923_v39 = vld [vmem:[#allocation6_spill] sm:$0xff]  ;;  %v3290_v12 = vunpack.i.h.bf16 %v5341_v20 }
 0x1a7   : > { %2658 = vmatmul.mubr.msk.f32.gmra.mrb[10].mxu0 %vm1818_vm9, %v5304_v13  ;;  %v5374_v17 = vpop.permute.xlu0 %3302 }
 0x1a8   : > { %v3273_v5 = vpop.permute.xlu1 %3272  ;;  %2705 = vmatprep.subr.bf16.mxu1 %v2704_v57  ;;  %2713 = vmatprep.subr.bf16.mxu0 %v2712_v41  ;;  %v3304_v8 = vunpack.i.l.bf16 %v5374_v17  ;;  %v3305_v30 = vunpack.i.h.bf16 %v5374_v17 }
 0x1a9   : > { %2707 = vmatpush1.bf16.msra.mxu1 %v2706_v56  ;;  %2715 = vmatpush1.bf16.msra.mxu0 %v2714_v31  ;;  %v3275_v11 = vunpack.i.h.bf16 %v3273_v5  ;;  %v3274_v29 = vunpack.i.l.bf16 %v3273_v5  ;;  %v5924_v56 = vld [vmem:[#allocation25_spill] sm:$0xff] }
 0x1aa   : > { %2224 = vmatprep.mubr.f32.mxu0 %v5904_v48  ;;  %v508_v23 = vsel %vm493_vm0, %v3304_v8, %v3305_v30 }
 0x1ab   : > { %v506_v34 = vsel %vm493_vm0, %v3274_v29, %v3275_v11  ;;  %v505_v3 = vsel %vm493_vm0, %v3270_v10, %v3274_v29  ;;  %v507_v2 = vsel %vm493_vm0, %v3275_v11, %v3304_v8  ;;  %v793_v8 = vsel %vm778_vm3, %v5002_v45, %v508_v23 }
 0x1ac   : > { %2659 = vmatmul.mubr.msk.f32.vlgmr.msra.gmra.mrb[6].mxu1 %vm1818_vm9, %v5244_v21  ;;  %2662 = vmatmul.mubr.msk.f32.vlgmr.msra.gmra.mrb[12].mxu0 %vm1818_vm9, %v5244_v21  ;;  %v791_v27 = vsel %vm778_vm3, %v5915_v1, %v506_v34  ;;  %v790_v44 = vsel %vm778_vm3, %v5916_v24, %v505_v3  ;;  %v792_v61 = vsel %vm778_vm3, %v4998_v9, %v507_v2 }
 0x1ad   : > { %2147 = vmatprep.mubr.f32.mxu1 %v5904_v48  ;;  %2230 = vmatprep.mubr.f32.mxu0 %v5904_v48  ;;  %v808_v7 = vsel %vm795_vm5, %v791_v27, %v5918_v25  ;;  %v807_v36 = vsel %vm795_vm5, %v790_v44, %v5919_v0  ;;  %v823_v9 = vsel %vm812_vm6, %v806_v54, %v5920_v51 }
 0x1ae   : > { %v809_v43 = vsel %vm795_vm5, %v792_v61, %v4953_v59  ;;  %v825_v62 = vsel %vm812_vm6, %v808_v7, %v5921_v32  ;;  %v824_v26 = vsel %vm812_vm6, %v807_v36, %v5922_v19  ;;  %v840_v49 = vsel %vm829_vm7, %v823_v9, %v5923_v39  ;;  %v5925_v36 = vld [vmem:[#allocation34_spill] sm:$0xff] }
 0x1af   : > { %v826_v58 = vsel %vm812_vm6, %v809_v43, %v4977_v18  ;;  %v1303_v59 = vsel %vm1292_vm1, %v3279_v52, %v3280_v63  ;;  %v842_v31 = vsel %vm829_vm7, %v825_v62, %v4918_v42  ;;  %v841_v5 = vsel %vm829_vm7, %v824_v26, %v5924_v56  ;;  %v5926_v43 = vld [vmem:[#allocation14_spill] sm:$0xff] }
 0x1b0   : > { %2660 = vmatmul.mubr.msk.f32.gmra.mrb[8].mxu1 %vm1818_vm9, %v5278_v38  ;;  %2663 = vmatmul.mubr.msk.f32.gmra.mrb[14].mxu0 %vm1818_vm9, %v5278_v38  ;;  %v3300_v52 = vunpack.i.h.bf16 %v5348_v15  ;;  %v843_v17 = vsel %vm829_vm7, %v826_v58, %v5044_v4  ;;  %v2718_v42 = vpack.c.bf16 %v1303_v59, %v840_v49  ;;  %v1476_v1 = vsel %vm1465_vm8, %v3289_v14, %v3290_v12 }
 0x1b1   : > { %2153 = vmatprep.mubr.f32.mxu1 %v5904_v48  ;;  %2236 = vmatprep.mubr.f32.mxu0 %v5904_v48 }
 0x1b2   : > { %v1695_v4 = vsel %vm1684_vm2, %v3299_v33, %v3300_v52 }
 0x1b3   : > { %v2722_v25 = vpack.c.bf16 %v1695_v4, %v1476_v1 }
 0x1b4   : > { %2661 = vmatmul.mubr.msk.f32.gmra.mrb[10].mxu1 %vm1818_vm9, %v5304_v13  ;;  %2664 = vmatmul.mubr.msk.f32.gmra.mrb[16].mxu0 %vm1818_vm9, %v5304_v13 }
 0x1b5   : > { %2307 = vmatprep.mubr.f32.mxu1 %v5904_v48  ;;  %2390 = vmatprep.mubr.f32.mxu0 %v5904_v48 }
 0x1bc   : > { %v5421_v47 = vpop.permute.xlu0 %3307  ;;  %v3283_v60 = vpop.permute.xlu1 %3282 }
 0x1bd   : > { %v3309_v22 = vunpack.i.l.bf16 %v5421_v47  ;;  %v3285_v40 = vunpack.i.h.bf16 %v3283_v60  ;;  %v3284_v37 = vunpack.i.l.bf16 %v3283_v60  ;;  %v3310_v45 = vunpack.i.h.bf16 %v5421_v47  ;;  %v5927_v60 = vld [vmem:[#allocation33_spill] sm:$0xff] }
 0x1bf   : > { %v1305_v57 = vsel %vm1292_vm1, %v3284_v37, %v3285_v40  ;;  %v1304_v18 = vsel %vm1292_vm1, %v3280_v63, %v3284_v37  ;;  %v1306_v6 = vsel %vm1292_vm1, %v3285_v40, %v3309_v22  ;;  %v810_v63 = vsel %vm795_vm5, %v793_v8, %v5925_v36 }
 0x1c0   : > { %v5440_v41 = vpop.permute.xlu0 %3312  ;;  %v2726_v10 = vpack.c.bf16 %v1305_v57, %v842_v31  ;;  %v3293_v11 = vpop.permute.xlu1 %3292  ;;  %v2716_v29 = vpack.c.bf16 %v1304_v18, %v841_v5  ;;  %v2724_v3 = vpack.c.bf16 %v1306_v6, %v843_v17  ;;  %v827_v62 = vsel %vm812_vm6, %v810_v63, %v4982_v28 }
 0x1c1   : > { %v3295_v55 = vunpack.i.h.bf16 %v3293_v11  ;;  %v3294_v34 = vunpack.i.l.bf16 %v3293_v11  ;;  %v3314_v46 = vunpack.i.l.bf16 %v5440_v41  ;;  %v1307_v26 = vsel %vm1292_vm1, %v3309_v22, %v3310_v45 }
 0x1c2   : > { %2717 = vmatprep.subr.bf16.mxu1 %v2716_v29  ;;  %2725 = vmatprep.subr.bf16.mxu0 %v2724_v3  ;;  %v844_v28 = vsel %vm829_vm7, %v827_v62, %v5047_v35 }
 0x1c3   : > { %2719 = vmatpush1.bf16.msra.mxu1 %v2718_v42  ;;  %2727 = vmatpush1.bf16.msra.mxu0 %v2726_v10  ;;  %v1477_v16 = vsel %vm1465_vm8, %v3290_v12, %v3294_v34  ;;  %v1478_v54 = vsel %vm1465_vm8, %v3294_v34, %v3295_v55  ;;  %v1479_v15 = vsel %vm1465_vm8, %v3295_v55, %v3314_v46 }
 0x1c4   : > { %v3318_v2 = vpop.permute.xlu0 %3317  ;;  %v1675_v44 = vpop.permute.xlu1 %1674 }
 0x1c5   : > { %v3320_v27 = vunpack.i.h.bf16 %v3318_v2  ;;  %v3319_v24 = vunpack.i.l.bf16 %v3318_v2  ;;  %v1696_v61 = vsel %vm1684_vm2, %v3300_v52, %v1675_v44 }
 0x1c6   : > { %v2720_v14 = vpack.c.bf16 %v1696_v61, %v1477_v16 }
 0x1c7   : > { %v1697_v20 = vsel %vm1684_vm2, %v1675_v44, %v3319_v24  ;;  %v1698_v33 = vsel %vm1684_vm2, %v3319_v24, %v3320_v27 }
 0x1c8   : > { %v2730_v7 = vpack.c.bf16 %v1697_v20, %v1478_v54  ;;  %v2728_v0 = vpack.c.bf16 %v1698_v33, %v1479_v15  ;;  %v492_v51 = vpop.permute.xlu1 %491  ;;  %2721 = vmatprep.subr.bf16.mxu1 %v2720_v14 }
 0x1c9   : > { %v509_v9 = vsel %vm493_vm0, %v3305_v30, %v492_v51  ;;  %2723 = vmatpush1.bf16.msra.mxu1 %v2722_v25 }
 0x1ca   : > { %2729 = vmatprep.subr.bf16.mxu0 %v2728_v0  ;;  %v794_v32 = vsel %vm778_vm3, %v5926_v43, %v509_v9 }
 0x1cb   : > { %2731 = vmatpush1.bf16.msra.mxu0 %v2730_v7  ;;  %v811_v19 = vsel %vm795_vm5, %v794_v32, %v5927_v60 }
 0x1cc   : > { %v828_v47 = vsel %vm812_vm6, %v811_v19, %v4968_v53  ;;  %v1291_v39 = vpop.permute.xlu1 %1290  ;;  %2665 = vmatmul.mubr.msk.f32.vlgmr.msra.gmra.mrb[12].mxu1 %vm1818_vm9, %v5244_v21  ;;  %v2734_v53 = vpack.c.bf16 %v1307_v26, %v844_v28 }
 0x1cd   : > { %v845_v49 = vsel %vm829_vm7, %v828_v47, %v5039_v50  ;;  %v1308_v40 = vsel %vm1292_vm1, %v3310_v45, %v1291_v39  ;;  %2313 = vmatprep.mubr.f32.mxu1 %v5904_v48  ;;  %v3315_v50 = vunpack.i.h.bf16 %v5440_v41 }
 0x1ce   : > { %2668 = vmatmul.mubr.msk.f32.vlgmr.msra.gmra.mrb[18].mxu0 %vm1818_vm9, %v5244_v21  ;;  %v2732_v22 = vpack.c.bf16 %v1308_v40, %v845_v49 }
 0x1cf   : > { %2396 = vmatprep.mubr.f32.mxu0 %v5904_v48  ;;  %v1480_v12 = vsel %vm1465_vm8, %v3314_v46, %v3315_v50 }
 0x1d0   : > { %v1464_v37 = vpop.permute.xlu1 %1463  ;;  %2733 = vmatprep.subr.bf16.mxu1 %v2732_v22  ;;  %2666 = vmatmul.mubr.msk.f32.gmra.mrb[14].mxu1 %vm1818_vm9, %v5278_v38 }
 0x1d1   : > { %2735 = vmatpush1.bf16.msra.mxu1 %v2734_v53  ;;  %2319 = vmatprep.mubr.f32.mxu1 %v5904_v48  ;;  %v1481_v30 = vsel %vm1465_vm8, %v3315_v50, %v1464_v37 }
 0x1d2   : > { %2669 = vmatmul.mubr.msk.f32.gmra.mrb[20].mxu0 %vm1818_vm9, %v5278_v38 }
 0x1d3   : > { %2402 = vmatprep.mubr.f32.mxu0 %v5904_v48 }
 0x1d4   : > { %v3323_v35 = vpop.permute.xlu1 %3322  ;;  %2667 = vmatmul.mubr.msk.f32.gmra.mrb[16].mxu1 %vm1818_vm9, %v5304_v13 }
 0x1d5   : > { %v3325_v58 = vunpack.i.h.bf16 %v3323_v35  ;;  %v3324_v59 = vunpack.i.l.bf16 %v3323_v35  ;;  %2473 = vmatprep.mubr.f32.mxu1 %v5904_v48 }
 0x1d6   : > { %2670 = vmatmul.mubr.msk.f32.gmra.mrb[22].mxu0 %vm1818_vm9, %v5304_v13  ;;  %v5514_v5 = vpop.permute.xlu0 %1805 }
 0x1d7   : > { %v1699_v31 = vsel %vm1684_vm2, %v3320_v27, %v3324_v59  ;;  %v1700_v57 = vsel %vm1684_vm2, %v3324_v59, %v3325_v58 }
 0x1d8   : > { %v2738_v41 = vpack.c.bf16 %v1699_v31, %v1480_v12  ;;  %v2736_v56 = vpack.c.bf16 %v1700_v57, %v1481_v30 }
 0x1da   : > { %2737 = vmatprep.subr.bf16.mxu1 %v2736_v56 }
 0x1db   : > { %2739 = vmatpush1.bf16.msra.mxu1 %v2738_v41 }
 0x1de   : > { %2671 = vmatmul.mubr.msk.f32.vlgmr.msra.gmra.mrb[18].mxu1 %vm1818_vm9, %v5244_v21 }
 0x1df   : > { %2479 = vmatprep.mubr.f32.mxu1 %v5904_v48 }
 0x1e2   : > { %2672 = vmatmul.mubr.msk.f32.gmra.mrb[20].mxu1 %vm1818_vm9, %v5278_v38 }
 0x1e3   : > { %2485 = vmatprep.mubr.f32.mxu1 %v5904_v48 }
 0x1e5   : > { %v5517_v10 = vpop.permute.xlu1 %1810 }
 0x1e6   : > { %2673 = vmatmul.mubr.msk.f32.gmra.mrb[22].mxu1 %vm1818_vm9, %v5304_v13 }
 0x1e9   : > { %v5531_v1 = vpop.permute.xlu1 %1815 }
 0x262   : > { %v1977_v18 = vpop.f32.mrb[0].mxu1 }
 0x263   : > { %v1979_v6 = vpop.f32.mrb[1].mxu1  ;;  %v1978_v52 = vadd.f32 %v1977_v18, %v5514_v5 }
 0x264   : > { %v1980_v21 = vadd.f32 %v1979_v6, %v5514_v5 }
 0x265   : > { %v2494_v38 = vmax.f32 %v1978_v52, 0.0 }
 0x266   : > { %v1894_v48 = vpop.f32.mrb[0].mxu0  ;;  %v2495_v11 = vmax.f32 %v1980_v21, 0.0  ;;  %v1983_v42 = vpop.f32.mrb[2].mxu1 }
 0x267   : > { %v1895_v13 = vadd.f32 %v1894_v48, %v5514_v5  ;;  %v1896_v29 = vpop.f32.mrb[1].mxu0  ;;  %2542 = vst [vmem:[%s5522_s22 + $0x10] sm:$0xff] %v2494_v38  ;;  %v1985_v34 = vpop.f32.mrb[3].mxu1  ;;  %v1984_v3 = vadd.f32 %v1983_v42, %v5517_v10 }
 0x268   : > { %v1897_v17 = vadd.f32 %v1896_v29, %v5514_v5  ;;  %2543 = vst [vmem:[%s5522_s22 + $0x18] sm:$0xff] %v2495_v11  ;;  %v1986_v2 = vadd.f32 %v1985_v34, %v5517_v10 }
 0x269   : > { %v2492_v55 = vmax.f32 %v1895_v13, 0.0  ;;  %v2510_v27 = vmax.f32 %v1984_v3, 0.0 }
 0x26a   : > { %v2493_v23 = vmax.f32 %v1897_v17, 0.0  ;;  %v1900_v46 = vpop.f32.mrb[2].mxu0  ;;  %v2511_v44 = vmax.f32 %v1986_v2, 0.0  ;;  %v1989_v16 = vpop.f32.mrb[4].mxu1 }
 0x26b   : > { %2540 = vst [vmem:[%s5522_s22] sm:$0xff] %v2492_v55  ;;  %v1901_v4 = vadd.f32 %v1900_v46, %v5517_v10  ;;  %v1902_v24 = vpop.f32.mrb[3].mxu0  ;;  %2558 = vst [vmem:[%s5522_s22 + $0x90] sm:$0xff] %v2510_v27  ;;  %v1991_v61 = vpop.f32.mrb[5].mxu1  ;;  %v1990_v20 = vadd.f32 %v1989_v16, %v5531_v1 }
 0x26c   : > { %2541 = vst [vmem:[%s5522_s22 + $0x8] sm:$0xff] %v2493_v23  ;;  %v1903_v8 = vadd.f32 %v1902_v24, %v5517_v10  ;;  %2559 = vst [vmem:[%s5522_s22 + $0x98] sm:$0xff] %v2511_v44  ;;  %v1992_v33 = vadd.f32 %v1991_v61, %v5531_v1 }
 0x26d   : > { %v2508_v54 = vmax.f32 %v1901_v4, 0.0  ;;  %v2526_v7 = vmax.f32 %v1990_v20, 0.0 }
 0x26e   : > { %v2509_v14 = vmax.f32 %v1903_v8, 0.0  ;;  %v1906_v15 = vpop.f32.mrb[4].mxu0  ;;  %v2527_v36 = vmax.f32 %v1992_v33, 0.0 }
 0x26f   : > { %2556 = vst [vmem:[%s5522_s22 + $0x80] sm:$0xff] %v2508_v54  ;;  %v1907_v25 = vadd.f32 %v1906_v15, %v5531_v1  ;;  %v1908_v0 = vpop.f32.mrb[5].mxu0  ;;  %2574 = vst [vmem:[%s5522_s22 + $0x110] sm:$0xf] %v2526_v7 }
 0x270   : > { %2557 = vst [vmem:[%s5522_s22 + $0x88] sm:$0xff] %v2509_v14  ;;  %v1909_v63 = vadd.f32 %v1908_v0, %v5531_v1  ;;  %2575 = vst [vmem:[%s5522_s22 + $0x118] sm:$0xf] %v2527_v36 }
 0x271   : > { %v2524_v45 = vmax.f32 %v1907_v25, 0.0 }
 0x272   : > { %v2525_v51 = vmax.f32 %v1909_v63, 0.0  ;;  %v2060_v9 = vpop.f32.mrb[6].mxu0 }
 0x273   : > { %2572 = vst [vmem:[%s5522_s22 + $0x100] sm:$0xf] %v2524_v45  ;;  %v2061_v43 = vadd.f32 %v2060_v9, %v5514_v5  ;;  %v2062_v32 = vpop.f32.mrb[7].mxu0 }
 0x274   : > { %2573 = vst [vmem:[%s5522_s22 + $0x108] sm:$0xf] %v2525_v51  ;;  %v2063_v62 = vadd.f32 %v2062_v32, %v5514_v5 }
 0x275   : > { %v2496_v60 = vmax.f32 %v2061_v43, 0.0 }
 0x276   : > { %v2497_v19 = vmax.f32 %v2063_v62, 0.0  ;;  %v2066_v26 = vpop.f32.mrb[8].mxu0 }
 0x277   : > { %2544 = vst [vmem:[%s5522_s22 + $0x20] sm:$0xff] %v2496_v60  ;;  %v2067_v47 = vadd.f32 %v2066_v26, %v5517_v10  ;;  %v2068_v39 = vpop.f32.mrb[9].mxu0 }
 0x278   : > { %2545 = vst [vmem:[%s5522_s22 + $0x28] sm:$0xff] %v2497_v19  ;;  %v2069_v49 = vadd.f32 %v2068_v39, %v5517_v10 }
 0x279   : > { %v2512_v40 = vmax.f32 %v2067_v47, 0.0 }
 0x27a   : > { %v2513_v28 = vmax.f32 %v2069_v49, 0.0  ;;  %v2072_v22 = vpop.f32.mrb[10].mxu0 }
 0x27b   : > { %2560 = vst [vmem:[%s5522_s22 + $0xa0] sm:$0xff] %v2512_v40  ;;  %v2073_v53 = vadd.f32 %v2072_v22, %v5531_v1  ;;  %v2074_v37 = vpop.f32.mrb[11].mxu0 }
 0x27c   : > { %2561 = vst [vmem:[%s5522_s22 + $0xa8] sm:$0xff] %v2513_v28  ;;  %v2075_v50 = vadd.f32 %v2074_v37, %v5531_v1 }
 0x27d   : > { %v2528_v35 = vmax.f32 %v2073_v53, 0.0 }
 0x27e   : > { %v2529_v58 = vmax.f32 %v2075_v50, 0.0 }
 0x27f   : > { %v2143_v59 = vpop.f32.mrb[6].mxu1  ;;  %2576 = vst [vmem:[%s5522_s22 + $0x120] sm:$0xf] %v2528_v35  ;;  %v2226_v31 = vpop.f32.mrb[12].mxu0 }
 0x280   : > { %v2144_v12 = vadd.f32 %v2143_v59, %v5514_v5  ;;  %v2145_v30 = vpop.f32.mrb[7].mxu1  ;;  %2577 = vst [vmem:[%s5522_s22 + $0x128] sm:$0xf] %v2529_v58  ;;  %v2227_v41 = vadd.f32 %v2226_v31, %v5514_v5  ;;  %v2228_v56 = vpop.f32.mrb[13].mxu0 }
 0x281   : > { %v2146_v57 = vadd.f32 %v2145_v30, %v5514_v5  ;;  %v2229_v6 = vadd.f32 %v2228_v56, %v5514_v5 }
 0x282   : > { %v2498_v18 = vmax.f32 %v2144_v12, 0.0  ;;  %v2500_v48 = vmax.f32 %v2227_v41, 0.0 }
 0x283   : > { %v2499_v52 = vmax.f32 %v2146_v57, 0.0  ;;  %v2149_v21 = vpop.f32.mrb[8].mxu1  ;;  %v2501_v11 = vmax.f32 %v2229_v6, 0.0  ;;  %v2232_v29 = vpop.f32.mrb[14].mxu0 }
 0x284   : > { %2546 = vst [vmem:[%s5522_s22 + $0x30] sm:$0xff] %v2498_v18  ;;  %v2150_v38 = vadd.f32 %v2149_v21, %v5517_v10  ;;  %v2151_v13 = vpop.f32.mrb[9].mxu1  ;;  %2548 = vst [vmem:[%s5522_s22 + $0x40] sm:$0xff] %v2500_v48  ;;  %v2233_v42 = vadd.f32 %v2232_v29, %v5517_v10  ;;  %v2234_v55 = vpop.f32.mrb[15].mxu0 }
 0x285   : > { %2547 = vst [vmem:[%s5522_s22 + $0x38] sm:$0xff] %v2499_v52  ;;  %v2152_v17 = vadd.f32 %v2151_v13, %v5517_v10  ;;  %2549 = vst [vmem:[%s5522_s22 + $0x48] sm:$0xff] %v2501_v11  ;;  %v2235_v3 = vadd.f32 %v2234_v55, %v5517_v10 }
 0x286   : > { %v2514_v34 = vmax.f32 %v2150_v38, 0.0  ;;  %v2516_v2 = vmax.f32 %v2233_v42, 0.0 }
 0x287   : > { %v2515_v23 = vmax.f32 %v2152_v17, 0.0  ;;  %v2155_v46 = vpop.f32.mrb[10].mxu1  ;;  %v2517_v24 = vmax.f32 %v2235_v3, 0.0  ;;  %v2238_v44 = vpop.f32.mrb[16].mxu0 }
 0x288   : > { %2562 = vst [vmem:[%s5522_s22 + $0xb0] sm:$0xff] %v2514_v34  ;;  %v2156_v4 = vadd.f32 %v2155_v46, %v5531_v1  ;;  %v2157_v27 = vpop.f32.mrb[11].mxu1  ;;  %2564 = vst [vmem:[%s5522_s22 + $0xc0] sm:$0xff] %v2516_v2  ;;  %v2239_v16 = vadd.f32 %v2238_v44, %v5531_v1  ;;  %v2240_v54 = vpop.f32.mrb[17].mxu0 }
 0x289   : > { %2563 = vst [vmem:[%s5522_s22 + $0xb8] sm:$0xff] %v2515_v23  ;;  %v2158_v8 = vadd.f32 %v2157_v27, %v5531_v1  ;;  %2565 = vst [vmem:[%s5522_s22 + $0xc8] sm:$0xff] %v2517_v24  ;;  %v2241_v20 = vadd.f32 %v2240_v54, %v5531_v1 }
 0x28a   : > { %v2530_v61 = vmax.f32 %v2156_v4, 0.0  ;;  %v2532_v15 = vmax.f32 %v2239_v16, 0.0 }
 0x28b   : > { %v2531_v14 = vmax.f32 %v2158_v8, 0.0  ;;  %v2533_v33 = vmax.f32 %v2241_v20, 0.0 }
 0x28c   : > { %2578 = vst [vmem:[%s5522_s22 + $0x130] sm:$0xf] %v2530_v61  ;;  %2580 = vst [vmem:[%s5522_s22 + $0x140] sm:$0xf] %v2532_v15 }
 0x28d   : > { %2579 = vst [vmem:[%s5522_s22 + $0x138] sm:$0xf] %v2531_v14  ;;  %2581 = vst [vmem:[%s5522_s22 + $0x148] sm:$0xf] %v2533_v33 }
 0x29f   : > { %v2309_v25 = vpop.f32.mrb[12].mxu1 }
 0x2a0   : > { %v2310_v7 = vadd.f32 %v2309_v25, %v5514_v5  ;;  %v2311_v0 = vpop.f32.mrb[13].mxu1 }
 0x2a1   : > { %v2392_v36 = vpop.f32.mrb[18].mxu0  ;;  %v2312_v63 = vadd.f32 %v2311_v0, %v5514_v5 }
 0x2a2   : > { %v2393_v45 = vadd.f32 %v2392_v36, %v5514_v5  ;;  %v2394_v51 = vpop.f32.mrb[19].mxu0  ;;  %v2502_v9 = vmax.f32 %v2310_v7, 0.0 }
 0x2a3   : > { %v2395_v43 = vadd.f32 %v2394_v51, %v5514_v5  ;;  %v2503_v32 = vmax.f32 %v2312_v63, 0.0  ;;  %v2315_v62 = vpop.f32.mrb[14].mxu1 }
 0x2a4   : > { %v2504_v60 = vmax.f32 %v2393_v45, 0.0  ;;  %2550 = vst [vmem:[%s5522_s22 + $0x50] sm:$0xff] %v2502_v9  ;;  %v2316_v19 = vadd.f32 %v2315_v62, %v5517_v10  ;;  %v2317_v26 = vpop.f32.mrb[15].mxu1 }
 0x2a5   : > { %v2505_v47 = vmax.f32 %v2395_v43, 0.0  ;;  %2551 = vst [vmem:[%s5522_s22 + $0x58] sm:$0xff] %v2503_v32  ;;  %v2318_v39 = vadd.f32 %v2317_v26, %v5517_v10  ;;  %v2398_v49 = vpop.f32.mrb[20].mxu0 }
 0x2a6   : > { %2552 = vst [vmem:[%s5522_s22 + $0x60] sm:$0xff] %v2504_v60  ;;  %v2518_v40 = vmax.f32 %v2316_v19, 0.0  ;;  %v2399_v28 = vadd.f32 %v2398_v49, %v5517_v10  ;;  %v2400_v22 = vpop.f32.mrb[21].mxu0 }
 0x2a7   : > { %2553 = vst [vmem:[%s5522_s22 + $0x68] sm:$0xff] %v2505_v47  ;;  %v2519_v53 = vmax.f32 %v2318_v39, 0.0  ;;  %v2321_v37 = vpop.f32.mrb[16].mxu1  ;;  %v2401_v50 = vadd.f32 %v2400_v22, %v5517_v10 }
 0x2a8   : > { %2566 = vst [vmem:[%s5522_s22 + $0xd0] sm:$0xff] %v2518_v40  ;;  %v2322_v35 = vadd.f32 %v2321_v37, %v5531_v1  ;;  %v2323_v58 = vpop.f32.mrb[17].mxu1  ;;  %v2520_v59 = vmax.f32 %v2399_v28, 0.0 }
 0x2a9   : > { %2567 = vst [vmem:[%s5522_s22 + $0xd8] sm:$0xff] %v2519_v53  ;;  %v2324_v12 = vadd.f32 %v2323_v58, %v5531_v1  ;;  %v2521_v30 = vmax.f32 %v2401_v50, 0.0  ;;  %v2404_v31 = vpop.f32.mrb[22].mxu0 }
 0x2aa   : > { %v2534_v57 = vmax.f32 %v2322_v35, 0.0  ;;  %2568 = vst [vmem:[%s5522_s22 + $0xe0] sm:$0xff] %v2520_v59  ;;  %v2405_v41 = vadd.f32 %v2404_v31, %v5531_v1  ;;  %v2406_v56 = vpop.f32.mrb[23].mxu0 }
 0x2ab   : > { %v2535_v18 = vmax.f32 %v2324_v12, 0.0  ;;  %2569 = vst [vmem:[%s5522_s22 + $0xe8] sm:$0xff] %v2521_v30  ;;  %v2407_v6 = vadd.f32 %v2406_v56, %v5531_v1 }
 0x2ac   : > { %2582 = vst [vmem:[%s5522_s22 + $0x150] sm:$0xf] %v2534_v57  ;;  %v2536_v52 = vmax.f32 %v2405_v41, 0.0 }
 0x2ad   : > { %2583 = vst [vmem:[%s5522_s22 + $0x158] sm:$0xf] %v2535_v18  ;;  %v2537_v21 = vmax.f32 %v2407_v6, 0.0 }
 0x2ae   : > { %2584 = vst [vmem:[%s5522_s22 + $0x160] sm:$0xf] %v2536_v52 }
 0x2af   : > { %2585 = vst [vmem:[%s5522_s22 + $0x168] sm:$0xf] %v2537_v21 }
 0x2b1   : > { %v2475_v48 = vpop.f32.mrb[18].mxu1 }
 0x2b2   : > { %v2476_v38 = vadd.f32 %v2475_v48, %v5514_v5  ;;  %v2477_v13 = vpop.f32.mrb[19].mxu1 }
 0x2b3   : > { %v2478_v11 = vadd.f32 %v2477_v13, %v5514_v5 }
 0x2b4   : > { %v2506_v29 = vmax.f32 %v2476_v38, 0.0 }
 0x2b5   : > { %v2507_v17 = vmax.f32 %v2478_v11, 0.0  ;;  %v2481_v42 = vpop.f32.mrb[20].mxu1 }
 0x2b6   : > { %2554 = vst [vmem:[%s5522_s22 + $0x70] sm:$0xff] %v2506_v29  ;;  %v2482_v55 = vadd.f32 %v2481_v42, %v5517_v10  ;;  %v2483_v34 = vpop.f32.mrb[21].mxu1 }
 0x2b7   : > { %2555 = vst [vmem:[%s5522_s22 + $0x78] sm:$0xff] %v2507_v17  ;;  %v2484_v3 = vadd.f32 %v2483_v34, %v5517_v10 }
 0x2b8   : > { %v2522_v23 = vmax.f32 %v2482_v55, 0.0 }
 0x2b9   : > { %v2523_v46 = vmax.f32 %v2484_v3, 0.0  ;;  %v2487_v2 = vpop.f32.mrb[22].mxu1 }
 0x2ba   : > { %2570 = vst [vmem:[%s5522_s22 + $0xf0] sm:$0xff] %v2522_v23  ;;  %v2488_v4 = vadd.f32 %v2487_v2, %v5531_v1  ;;  %v2489_v27 = vpop.f32.mrb[23].mxu1 }
 0x2bb   : > { %2571 = vst [vmem:[%s5522_s22 + $0xf8] sm:$0xff] %v2523_v46  ;;  %v2490_v5 = vadd.f32 %v2489_v27, %v5531_v1 }
 0x2bc   : > { %v2538_v24 = vmax.f32 %v2488_v4, 0.0 }
 0x2bd   : > { %v2539_v44 = vmax.f32 %v2490_v5, 0.0 }
 0x2be   : > { %2586 = vst [vmem:[%s5522_s22 + $0x170] sm:$0xf] %v2538_v24 }
 0x2bf   : > { %2587 = vst [vmem:[%s5522_s22 + $0x178] sm:$0xf] %v2539_v44 }
 0x2c0 PF: > { %s13_s12 = sadd.s32 1, %s3335_s12  }
 0x2c1   : > { %p10_p4 = scmp.ge.s32.totalorder %s13_s12, 4  }
 0x2c3   :  { %12 = sbr.rel (!%p10_p4) target bundleno = 1 (0x1), region = 62 }

</bundles_post_ra>
